<compile_context>
chip_gen: v6e
topology: v6e:2x2x1
jax: 0.10.0
libtpu: 0.0.40
codegen_flags: <defaults>
</compile_context>

<pallas_src>
import math

import jax
import jax.numpy as jnp
from jax import lax
from jax.experimental import pallas as pl
from jax.experimental.pallas import tpu as pltpu


def make_block_kernel(num_heads, head_dim, L, TQ, compute_dtype, eps=1e-5):
    H, D = num_heads, head_dim
    C = H * D
    cd = compute_dtype
    approx_recip = jnp.dtype(cd) != jnp.dtype(jnp.float32)

    def layernorm(z, gamma, beta):
        mean = jnp.mean(z, axis=-1, keepdims=True)
        zc = z - mean
        var = jnp.mean(zc * zc, axis=-1, keepdims=True)
        return zc * lax.rsqrt(var + eps) * gamma + beta

    def gelu_exact(z):
        # nn.GELU default = exact erf formulation (matches PyTorch numerics).
        # TODO(synk): optionally switch to the tanh approximation (EUP slot) on
        # v6e/v7x if numerics permit.
        return 0.5 * z * (1.0 + lax.erf(z * (1.0 / math.sqrt(2.0))))

    def kernel(x_ref, wq_ref, wkv_ref, wproj_ref, w1_ref, w2_ref, b1_ref,
               vec_ref, o_ref, kv_scr):
        qi = pl.program_id(1)

        bproj = vec_ref[0:1, :]
        g2, be2 = vec_ref[1:2, :], vec_ref[2:3, :]
        b2 = vec_ref[3:4, :]
        g1, be1 = vec_ref[4:5, :], vec_ref[5:6, :]

        # ---- K / V for the full sequence, computed once per batch element ----
        @pl.when(qi == 0)
        def _():
            x_full = x_ref[0]                                   # (L, C)
            kv_t = lax.dot_general(
                wkv_ref[...], x_full.astype(cd),
                (((1,), (1,)), ((), ())),
                preferred_element_type=jnp.float32)             # (2C, L) f32
            kv_scr[...] = kv_t.reshape(2, H, D, L)              # free major-dim split

        q0 = pl.multiple_of(qi * TQ, TQ)
        x_tile = x_ref[0, pl.ds(q0, TQ), :]                     # (TQ, C) io dtype

        # ---- Q for this query tile (softmax scale pre-folded into wq) ----
        q_cl = lax.dot_general(wq_ref[...], x_tile.astype(cd),
                               (((1,), (1,)), ((), ())),
                               preferred_element_type=jnp.float32)   # (C, TQ)
        q_hdl = q_cl.reshape(H, D, TQ).astype(cd)               # (H, D, TQ)
        k_hdl = kv_scr[0].astype(cd)                            # (H, D, L)
        v_hdl = kv_scr[1].astype(cd)                            # (H, D, L)

        # ---- scores / unnormalized softmax / P@V (head-batched dot_generals) ----
        s = lax.dot_general(q_hdl, k_hdl,
                            (((1,), (1,)), ((0,), (0,))),
                            preferred_element_type=jnp.float32)      # (H, TQ, L)
        s = s - jnp.max(s, axis=-1, keepdims=True)
        p = jnp.exp(s)
        l = jnp.sum(p, axis=-1)                                 # (H, TQ) f32
        o_hdl = lax.dot_general(v_hdl, p.astype(cd),
                                (((2,), (2,)), ((0,), (0,))),
                                preferred_element_type=jnp.float32)  # (H, D, TQ) f32
        # Softmax denominator folded into the small (H, D, TQ) output, not into P.
        o_hdl = o_hdl * pl.reciprocal(l, approx=approx_recip)[:, None, :]

        # ---- output projection: contract (C, TQ) on dim 0 -> (TQ, C) ----
        attn_cl = o_hdl.reshape(C, TQ)                          # free major-dim merge
        attn_out = lax.dot_general(attn_cl.astype(cd), wproj_ref[...],
                                   (((0,), (0,)), ((), ())),
                                   preferred_element_type=jnp.float32) + bproj

        x1 = x_tile.astype(jnp.float32) + attn_out              # residual 1 (f32)

        # ---- MLP (pre-norm with norm2) ----
        xn = layernorm(x1, g2, be2)
        h1 = jnp.dot(xn.astype(cd), w1_ref[...],
                     preferred_element_type=jnp.float32) + b1_ref[...]
        h1 = gelu_exact(h1)
        h2 = jnp.dot(h1.astype(cd), w2_ref[...],
                     preferred_element_type=jnp.float32) + b2

        x2 = x1 + h2                                            # residual 2 (f32)

        # ---- final norm1 ----
        # TODO(synk): if real model width C < 128, pack the output lane-dense
        # (e.g. (1, TQ*C)) to avoid masked vst.msk partial stores.
        o_ref[0] = layernorm(x2, g1, be1).astype(o_ref.dtype)

    return kernel


def _pick_query_tile(L):
    if L >= 512 and L % 256 == 0:
        return 256
    if L >= 256 and L % 128 == 0:
        return 128
    return L


def block_forward(x, params, num_heads, *, compute_dtype=jnp.bfloat16,
                  weight_mode="resident"):
    B, L, C = x.shape
    assert C % num_heads == 0
    D = C // num_heads
    scale = D ** (-0.5)
    Hm = params["w1"].shape[0]
    cd = compute_dtype
    TQ = _pick_query_tile(L)
    n_q = L // TQ

    # ---- host-side weight layout plumbing (free, exact) ----
    wqkv = params["wqkv"].astype(jnp.float32)        # (3C, C), rows [Q][K][V] head-major
    wq = (wqkv[:C] * scale).astype(cd)               # (C, C): softmax scale folded in
    wkv = wqkv[C:].astype(cd)                        # (2C, C): rows [K][V]
    wproj_t = params["wproj"].T.astype(cd)           # (C, C): contracted on dim 0
    w1_t = params["w1"].T.astype(cd)                 # (C, Hm)
    w2_t = params["w2"].T.astype(cd)                 # (Hm, C)
    b1 = params["b1"].reshape(1, Hm).astype(jnp.float32)
    zrow = jnp.zeros((C,), jnp.float32)
    vecs = jnp.stack([params["bproj"], params["gamma2"], params["beta2"],
                      params["b2"], params["gamma1"], params["beta1"],
                      zrow, zrow]).astype(jnp.float32)        # (8, C) packed slab

    def wspec(shape):
        if weight_mode == "resident":
            # Whole array VMEM-resident once (no per-step double buffering).
            return pl.BlockSpec(memory_space=pltpu.MemorySpace.VMEM)
        n = len(shape)
        idx = lambda b, qi, _n=n: (0,) * _n
        if weight_mode == "single":
            # Constant-index weights: single buffer instead of double buffering.
            return pl.BlockSpec(shape, idx, pipeline_mode=pl.Buffered(1))
        return pl.BlockSpec(shape, idx)

    # ---- capacity-aware VMEM budget ----
    try:
        vmem_cap = int(pltpu.get_tpu_info().vmem_capacity_bytes)
    except Exception:
        vmem_cap = 64 << 20                          # v7x per-TC capacity (smallest)
    cdb = jnp.dtype(cd).itemsize
    iob = jnp.dtype(x.dtype).itemsize
    weight_bytes = (C * C + 2 * C * C + C * C + C * Hm + Hm * C) * cdb \
        + (8 * C + Hm) * 4
    if weight_mode == "blocked":
        weight_bytes *= 2                            # plain blocked specs double-buffer
    io_bytes = 2 * L * C * iob + 2 * TQ * C * iob    # x slab + out tile, 2-deep
    scr_bytes = 2 * C * L * 4                        # persistent K/V scratch (f32)
    act_bytes = (2 * num_heads * TQ * L + 3 * C * L + 2 * C * TQ
                 + 2 * TQ * Hm + 8 * TQ * C) * 4
    need = weight_bytes + io_bytes + scr_bytes + 2 * act_bytes + (8 << 20)
    vmem_limit = min(max(need, 32 << 20), int(vmem_cap * 0.85))

    kernel = make_block_kernel(num_heads, D, L, TQ, cd)

    return pl.pallas_call(
        kernel,
        out_shape=jax.ShapeDtypeStruct((B, L, C), x.dtype),
        grid=(B, n_q),
        in_specs=[
            pl.BlockSpec((1, L, C), lambda b, qi: (b, 0, 0)),   # x: full slab per b
            wspec(wq.shape),
            wspec(wkv.shape),
            wspec(wproj_t.shape),
            wspec(w1_t.shape),
            wspec(w2_t.shape),
            wspec(b1.shape),
            wspec(vecs.shape),
        ],
        out_specs=pl.BlockSpec((1, TQ, C), lambda b, qi: (b, qi, 0)),
        scratch_shapes=[pltpu.VMEM((2, num_heads, D, L), jnp.float32)],
        compiler_params=pltpu.CompilerParams(
            # TODO(synk): for B==1 on v7x, also mark the query axis parallel and
            # recompute K/V per core so both TensorCores get work.
            dimension_semantics=("parallel", "arbitrary"),
            vmem_limit_bytes=vmem_limit),
    )(x, wq, wkv, wproj_t, w1_t, w2_t, b1, vecs)


def reference_forward(x, params, num_heads):
    """Pure-JAX replica of Block._forward (skip=None, dropout inactive)."""
    B, L, C = x.shape
    D = C // num_heads
    scale = D ** (-0.5)
    qkv = x @ params["wqkv"].T                                    # (B, L, 3C)
    qkv = qkv.reshape(B, L, 3, num_heads, D).transpose(2, 0, 3, 1, 4)
    q, k, v = qkv[0], qkv[1], qkv[2]                              # (B, H, L, D)
    attn = jnp.einsum("bhld,bhmd->bhlm", q, k) * scale
    attn = jax.nn.softmax(attn, axis=-1)
    out = jnp.einsum("bhlm,bhmd->bhld", attn, v)
    out = out.transpose(0, 2, 1, 3).reshape(B, L, C)
    out = out @ params["wproj"].T + params["bproj"]
    x1 = x + out

    def ln(z, g, bta):
        m = z.mean(-1, keepdims=True)
        vv = ((z - m) ** 2).mean(-1, keepdims=True)
        return (z - m) / jnp.sqrt(vv + 1e-5) * g + bta

    xn = ln(x1, params["gamma2"], params["beta2"])
    h = xn @ params["w1"].T + params["b1"]
    h = 0.5 * h * (1.0 + lax.erf(h / jnp.sqrt(2.0)))
    h = h @ params["w2"].T + params["b2"]
    x2 = x1 + h
    return ln(x2, params["gamma1"], params["beta1"])


if __name__ == "__main__":
    # Small shapes consistent with the module: dim=32, heads=4, mlp_dim=64.
    B, L, C = 2, 8, 32
    num_heads = 4
    mlp_hidden = 64

    key = jax.random.PRNGKey(0)
    ks = jax.random.split(key, 8)
    params = {
        "wqkv":  0.05 * jax.random.normal(ks[0], (3 * C, C), jnp.float32),   # qkv_bias=False
        "wproj": 0.05 * jax.random.normal(ks[1], (C, C), jnp.float32),
        "bproj": 0.05 * jax.random.normal(ks[2], (C,), jnp.float32),
        "w1":    0.05 * jax.random.normal(ks[3], (mlp_hidden, C), jnp.float32),
        "b1":    0.05 * jax.random.normal(ks[4], (mlp_hidden,), jnp.float32),
        "w2":    0.05 * jax.random.normal(ks[5], (C, mlp_hidden), jnp.float32),
        "b2":    0.05 * jax.random.normal(ks[6], (C,), jnp.float32),
        "gamma2": jnp.ones((C,), jnp.float32),
        "beta2":  jnp.zeros((C,), jnp.float32),
        "gamma1": jnp.ones((C,), jnp.float32),
        "beta1":  jnp.zeros((C,), jnp.float32),
    }
    x = jax.random.normal(ks[7], (B, L, C), jnp.float32)

    ref = reference_forward(x, params, num_heads)

    def run(x_in, cdt):
        last_err = None
        # Resident VMEM weights preferred; fall back to single-buffered / plain
        # blocked specs if this jax/pallas version rejects either form.
        for mode in ("resident", "single", "blocked"):
            try:
                out = block_forward(x_in, params, num_heads,
                                    compute_dtype=cdt, weight_mode=mode)
                return jax.block_until_ready(out)
            except Exception as e:  # noqa: BLE001 - cascade to next spec mode
                last_err = e
        raise last_err

    # f32 I/O + f32 compute: strict check of the kernel math against the reference.
    out_f32 = run(x, jnp.float32)
    assert out_f32.shape == (B, L, C)
    err32 = jnp.max(jnp.abs(out_f32 - ref))
    assert jnp.allclose(out_f32, ref, atol=1e-4, rtol=1e-4), (
        f"f32 max abs err = {err32}")

    # bf16-streamed I/O + bf16 MXU operands (f32 accumulation): performance path.
    out_bf16 = run(x.astype(jnp.bfloat16), jnp.bfloat16)
    assert out_bf16.dtype == jnp.bfloat16
    errbf = jnp.max(jnp.abs(out_bf16.astype(jnp.float32) - ref))
    assert jnp.allclose(out_bf16.astype(jnp.float32), ref, atol=7e-2, rtol=7e-2), (
        f"bf16 max abs err = {errbf}")

    print("KERNEL_OK")
</pallas_src>

<mosaic_0001>
module attributes {stable_mosaic.version = 11 : i64} {
  func.func @kernel(%arg0: i32, %arg1: i32, %arg2: memref<1x8x32xf32, #tpu.memory_space<vmem>>, %arg3: memref<32x32xf32, #tpu.memory_space<vmem>>, %arg4: memref<64x32xf32, #tpu.memory_space<vmem>>, %arg5: memref<32x32xf32, #tpu.memory_space<vmem>>, %arg6: memref<32x64xf32, #tpu.memory_space<vmem>>, %arg7: memref<64x32xf32, #tpu.memory_space<vmem>>, %arg8: memref<1x64xf32, #tpu.memory_space<vmem>>, %arg9: memref<8x32xf32, #tpu.memory_space<vmem>>, %arg10: memref<1x8x32xf32, #tpu.memory_space<vmem>>, %arg11: memref<2x4x8x8xf32, #tpu.memory_space<vmem>>) attributes {dimension_semantics = [#tpu.dimension_semantics<parallel>, #tpu.dimension_semantics<arbitrary>], iteration_bounds = array<i64: 2, 1>, scalar_prefetch = 0 : i64, scratch_operands = 1 : i64, tpu.core_type = #tpu.core_type<tc>, window_params = [{transform_indices = @transform_0, window_bounds = array<i64: 1, 8, 32>}, {pipeline_mode = #tpu.pipeline_mode<synchronous>, transform_indices = @transform_1, window_bounds = array<i64: 32, 32>}, {pipeline_mode = #tpu.pipeline_mode<synchronous>, transform_indices = @transform_2, window_bounds = array<i64: 64, 32>}, {pipeline_mode = #tpu.pipeline_mode<synchronous>, transform_indices = @transform_3, window_bounds = array<i64: 32, 32>}, {pipeline_mode = #tpu.pipeline_mode<synchronous>, transform_indices = @transform_4, window_bounds = array<i64: 32, 64>}, {pipeline_mode = #tpu.pipeline_mode<synchronous>, transform_indices = @transform_5, window_bounds = array<i64: 64, 32>}, {pipeline_mode = #tpu.pipeline_mode<synchronous>, transform_indices = @transform_6, window_bounds = array<i64: 1, 64>}, {pipeline_mode = #tpu.pipeline_mode<synchronous>, transform_indices = @transform_7, window_bounds = array<i64: 8, 32>}, {transform_indices = @transform_8, window_bounds = array<i64: 1, 8, 32>}]} {
    %c0 = arith.constant 0 : index
    %c0_0 = arith.constant 0 : index
    %0 = vector.load %arg9[%c0, %c0_0] : memref<8x32xf32, #tpu.memory_space<vmem>>, vector<1x32xf32>
    %c1 = arith.constant 1 : index
    %c0_1 = arith.constant 0 : index
    %1 = vector.load %arg9[%c1, %c0_1] : memref<8x32xf32, #tpu.memory_space<vmem>>, vector<1x32xf32>
    %c2 = arith.constant 2 : index
    %c0_2 = arith.constant 0 : index
    %2 = vector.load %arg9[%c2, %c0_2] : memref<8x32xf32, #tpu.memory_space<vmem>>, vector<1x32xf32>
    %c3 = arith.constant 3 : index
    %c0_3 = arith.constant 0 : index
    %3 = vector.load %arg9[%c3, %c0_3] : memref<8x32xf32, #tpu.memory_space<vmem>>, vector<1x32xf32>
    %c4 = arith.constant 4 : index
    %c0_4 = arith.constant 0 : index
    %4 = vector.load %arg9[%c4, %c0_4] : memref<8x32xf32, #tpu.memory_space<vmem>>, vector<1x32xf32>
    %c5 = arith.constant 5 : index
    %c0_5 = arith.constant 0 : index
    %5 = vector.load %arg9[%c5, %c0_5] : memref<8x32xf32, #tpu.memory_space<vmem>>, vector<1x32xf32>
    %c0_i32 = arith.constant 0 : i32
    %6 = arith.cmpi eq, %arg1, %c0_i32 : i32
    %7 = arith.extui %6 : i1 to i32
    %c0_i32_6 = arith.constant 0 : i32
    %8 = arith.cmpi ne, %7, %c0_i32_6 : i32
    scf.if %8 {
      %c0_50 = arith.constant 0 : index
      %c0_51 = arith.constant 0 : index
      %c0_52 = arith.constant 0 : index
      %100 = vector.load %arg2[%c0_50, %c0_51, %c0_52] : memref<1x8x32xf32, #tpu.memory_space<vmem>>, vector<1x8x32xf32>
      %101 = vector.shape_cast %100 : vector<1x8x32xf32> to vector<8x32xf32>
      %c0_53 = arith.constant 0 : index
      %c0_54 = arith.constant 0 : index
      %102 = vector.load %arg4[%c0_53, %c0_54] : memref<64x32xf32, #tpu.memory_space<vmem>>, vector<64x32xf32>
      %cst_55 = arith.constant dense<0.000000e+00> : vector<64x8xf32>
      %103 = tpu.matmul %102, %101, %cst_55 {dimension_numbers = #tpu.dot_dimension_numbers<[1], [1], [0], [0], [0, 0, 1, 0], [], []>} : vector<64x32xf32>, vector<8x32xf32>, vector<64x8xf32> -> vector<64x8xf32>
      %104 = vector.shape_cast %103 : vector<64x8xf32> to vector<2x4x8x8xf32>
      %c0_56 = arith.constant 0 : index
      %c0_57 = arith.constant 0 : index
      %c0_58 = arith.constant 0 : index
      %c0_59 = arith.constant 0 : index
      %105 = vector.load %arg11[%c0_56, %c0_57, %c0_58, %c0_59] : memref<2x4x8x8xf32, #tpu.memory_space<vmem>>, vector<2x4x8x8xf32>
      tpu.vector_store %arg11[%c0_56, %c0_57, %c0_58, %c0_59], %104 {strides = array<i32>} : memref<2x4x8x8xf32, #tpu.memory_space<vmem>>, vector<2x4x8x8xf32>,
    } else {
    }
    %c8_i32 = arith.constant 8 : i32
    %9 = arith.muli %arg1, %c8_i32 : i32
    %10 = tpu.assume_multiple %9, 8 : i32
    %c0_7 = arith.constant 0 : index
    %11 = arith.index_cast %10 : i32 to index
    %c0_8 = arith.constant 0 : index
    %12 = vector.load %arg2[%c0_7, %11, %c0_8] : memref<1x8x32xf32, #tpu.memory_space<vmem>>, vector<1x8x32xf32>
    %13 = vector.shape_cast %12 : vector<1x8x32xf32> to vector<8x32xf32>
    %c0_9 = arith.constant 0 : index
    %c0_10 = arith.constant 0 : index
    %14 = vector.load %arg3[%c0_9, %c0_10] : memref<32x32xf32, #tpu.memory_space<vmem>>, vector<32x32xf32>
    %cst = arith.constant dense<0.000000e+00> : vector<32x8xf32>
    %15 = tpu.matmul %14, %13, %cst {dimension_numbers = #tpu.dot_dimension_numbers<[1], [1], [0], [0], [0, 0, 1, 0], [], []>} : vector<32x32xf32>, vector<8x32xf32>, vector<32x8xf32> -> vector<32x8xf32>
    %16 = vector.shape_cast %15 : vector<32x8xf32> to vector<4x8x8xf32>
    %c0_11 = arith.constant 0 : index
    %c0_12 = arith.constant 0 : index
    %c0_13 = arith.constant 0 : index
    %c0_14 = arith.constant 0 : index
    %17 = vector.load %arg11[%c0_11, %c0_12, %c0_13, %c0_14] : memref<2x4x8x8xf32, #tpu.memory_space<vmem>>, vector<1x4x8x8xf32>
    %18 = vector.shape_cast %17 : vector<1x4x8x8xf32> to vector<4x8x8xf32>
    %c1_15 = arith.constant 1 : index
    %c0_16 = arith.constant 0 : index
    %c0_17 = arith.constant 0 : index
    %c0_18 = arith.constant 0 : index
    %19 = vector.load %arg11[%c1_15, %c0_16, %c0_17, %c0_18] : memref<2x4x8x8xf32, #tpu.memory_space<vmem>>, vector<1x4x8x8xf32>
    %20 = vector.shape_cast %19 : vector<1x4x8x8xf32> to vector<4x8x8xf32>
    %cst_19 = arith.constant dense<0.000000e+00> : vector<4x8x8xf32>
    %21 = tpu.matmul %16, %18, %cst_19 {dimension_numbers = #tpu.dot_dimension_numbers<[1], [1], [2], [2], [0, 0, 0, 2, 1, 2], [0], [0]>} : vector<4x8x8xf32>, vector<4x8x8xf32>, vector<4x8x8xf32> -> vector<4x8x8xf32>
    %cst_20 = arith.constant dense<0xFF800000> : vector<4x8xf32>
    %22 = vector.multi_reduction <maximumf>, %21, %cst_20 [2] : vector<4x8x8xf32> to vector<4x8xf32>
    %23 = vector.shape_cast %22 : vector<4x8xf32> to vector<4x8x1xf32>
    %24 = vector.broadcast %23 : vector<4x8x1xf32> to vector<4x8x8xf32>
    %25 = arith.subf %21, %24 : vector<4x8x8xf32>
    %26 = math.exp %25 : vector<4x8x8xf32>
    %cst_21 = arith.constant dense<0.000000e+00> : vector<4x8xf32>
    %27 = vector.multi_reduction <add>, %26, %cst_21 [2] : vector<4x8x8xf32> to vector<4x8xf32>
    %cst_22 = arith.constant dense<0.000000e+00> : vector<4x8x8xf32>
    %28 = tpu.matmul %20, %26, %cst_22 {dimension_numbers = #tpu.dot_dimension_numbers<[2], [2], [1], [1], [0, 0, 0, 1, 1, 1], [0], [0]>} : vector<4x8x8xf32>, vector<4x8x8xf32>, vector<4x8x8xf32> -> vector<4x8x8xf32>
    %29 = tpu.reciprocal %27 : vector<4x8xf32> -> vector<4x8xf32>
    %30 = vector.shape_cast %29 : vector<4x8xf32> to vector<4x1x8xf32>
    %31 = vector.broadcast %30 : vector<4x1x8xf32> to vector<4x8x8xf32>
    %32 = arith.mulf %28, %31 : vector<4x8x8xf32>
    %33 = vector.shape_cast %32 : vector<4x8x8xf32> to vector<32x8xf32>
    %c0_23 = arith.constant 0 : index
    %c0_24 = arith.constant 0 : index
    %34 = vector.load %arg5[%c0_23, %c0_24] : memref<32x32xf32, #tpu.memory_space<vmem>>, vector<32x32xf32>
    %cst_25 = arith.constant dense<0.000000e+00> : vector<8x32xf32>
    %35 = tpu.matmul %33, %34, %cst_25 {dimension_numbers = #tpu.dot_dimension_numbers<[0], [0], [1], [1], [0, 1, 1, 1], [], []>} : vector<32x8xf32>, vector<32x32xf32>, vector<8x32xf32> -> vector<8x32xf32>
    %36 = vector.broadcast %0 : vector<1x32xf32> to vector<8x32xf32>
    %37 = arith.addf %35, %36 : vector<8x32xf32>
    %38 = arith.addf %13, %37 : vector<8x32xf32>
    %cst_26 = arith.constant dense<0.000000e+00> : vector<8xf32>
    %39 = vector.multi_reduction <add>, %38, %cst_26 [1] : vector<8x32xf32> to vector<8xf32>
    %40 = vector.shape_cast %39 : vector<8xf32> to vector<8x1xf32>
    %cst_27 = arith.constant 3.200000e+01 : f32
    %41 = vector.broadcast %cst_27 : f32 to vector<8x1xf32>
    %42 = arith.divf %40, %41 : vector<8x1xf32>
    %43 = vector.broadcast %42 : vector<8x1xf32> to vector<8x32xf32>
    %44 = arith.subf %38, %43 : vector<8x32xf32>
    %45 = arith.mulf %44, %44 : vector<8x32xf32>
    %cst_28 = arith.constant dense<0.000000e+00> : vector<8xf32>
    %46 = vector.multi_reduction <add>, %45, %cst_28 [1] : vector<8x32xf32> to vector<8xf32>
    %47 = vector.shape_cast %46 : vector<8xf32> to vector<8x1xf32>
    %cst_29 = arith.constant 3.200000e+01 : f32
    %48 = vector.broadcast %cst_29 : f32 to vector<8x1xf32>
    %49 = arith.divf %47, %48 : vector<8x1xf32>
    %cst_30 = arith.constant 9.99999974E-6 : f32
    %50 = vector.broadcast %cst_30 : f32 to vector<8x1xf32>
    %51 = arith.addf %49, %50 : vector<8x1xf32>
    %52 = math.rsqrt %51 : vector<8x1xf32>
    %53 = vector.broadcast %52 : vector<8x1xf32> to vector<8x32xf32>
    %54 = arith.mulf %44, %53 : vector<8x32xf32>
    %55 = vector.broadcast %1 : vector<1x32xf32> to vector<8x32xf32>
    %56 = arith.mulf %54, %55 : vector<8x32xf32>
    %57 = vector.broadcast %2 : vector<1x32xf32> to vector<8x32xf32>
    %58 = arith.addf %56, %57 : vector<8x32xf32>
    %c0_31 = arith.constant 0 : index
    %c0_32 = arith.constant 0 : index
    %59 = vector.load %arg6[%c0_31, %c0_32] : memref<32x64xf32, #tpu.memory_space<vmem>>, vector<32x64xf32>
    %cst_33 = arith.constant dense<0.000000e+00> : vector<8x64xf32>
    %60 = tpu.matmul %58, %59, %cst_33 {dimension_numbers = #tpu.dot_dimension_numbers<[1], [0], [0], [1], [0, 0, 1, 1], [], []>} : vector<8x32xf32>, vector<32x64xf32>, vector<8x64xf32> -> vector<8x64xf32>
    %c0_34 = arith.constant 0 : index
    %c0_35 = arith.constant 0 : index
    %61 = vector.load %arg8[%c0_34, %c0_35] : memref<1x64xf32, #tpu.memory_space<vmem>>, vector<1x64xf32>
    %62 = vector.broadcast %61 : vector<1x64xf32> to vector<8x64xf32>
    %63 = arith.addf %60, %62 : vector<8x64xf32>
    %cst_36 = arith.constant 5.000000e-01 : f32
    %64 = vector.broadcast %cst_36 : f32 to vector<8x64xf32>
    %65 = arith.mulf %64, %63 : vector<8x64xf32>
    %cst_37 = arith.constant 0.707106769 : f32
    %66 = vector.broadcast %cst_37 : f32 to vector<8x64xf32>
    %67 = arith.mulf %63, %66 : vector<8x64xf32>
    %68 = math.erf %67 : vector<8x64xf32>
    %cst_38 = arith.constant 1.000000e+00 : f32
    %69 = vector.broadcast %cst_38 : f32 to vector<8x64xf32>
    %70 = arith.addf %69, %68 : vector<8x64xf32>
    %71 = arith.mulf %65, %70 : vector<8x64xf32>
    %c0_39 = arith.constant 0 : index
    %c0_40 = arith.constant 0 : index
    %72 = vector.load %arg7[%c0_39, %c0_40] : memref<64x32xf32, #tpu.memory_space<vmem>>, vector<64x32xf32>
    %cst_41 = arith.constant dense<0.000000e+00> : vector<8x32xf32>
    %73 = tpu.matmul %71, %72, %cst_41 {dimension_numbers = #tpu.dot_dimension_numbers<[1], [0], [0], [1], [0, 0, 1, 1], [], []>} : vector<8x64xf32>, vector<64x32xf32>, vector<8x32xf32> -> vector<8x32xf32>
    %74 = vector.broadcast %3 : vector<1x32xf32> to vector<8x32xf32>
    %75 = arith.addf %73, %74 : vector<8x32xf32>
    %76 = arith.addf %38, %75 : vector<8x32xf32>
    %cst_42 = arith.constant dense<0.000000e+00> : vector<8xf32>
    %77 = vector.multi_reduction <add>, %76, %cst_42 [1] : vector<8x32xf32> to vector<8xf32>
    %78 = vector.shape_cast %77 : vector<8xf32> to vector<8x1xf32>
    %cst_43 = arith.constant 3.200000e+01 : f32
    %79 = vector.broadcast %cst_43 : f32 to vector<8x1xf32>
    %80 = arith.divf %78, %79 : vector<8x1xf32>
    %81 = vector.broadcast %80 : vector<8x1xf32> to vector<8x32xf32>
    %82 = arith.subf %76, %81 : vector<8x32xf32>
    %83 = arith.mulf %82, %82 : vector<8x32xf32>
    %cst_44 = arith.constant dense<0.000000e+00> : vector<8xf32>
    %84 = vector.multi_reduction <add>, %83, %cst_44 [1] : vector<8x32xf32> to vector<8xf32>
    %85 = vector.shape_cast %84 : vector<8xf32> to vector<8x1xf32>
    %cst_45 = arith.constant 3.200000e+01 : f32
    %86 = vector.broadcast %cst_45 : f32 to vector<8x1xf32>
    %87 = arith.divf %85, %86 : vector<8x1xf32>
    %cst_46 = arith.constant 9.99999974E-6 : f32
    %88 = vector.broadcast %cst_46 : f32 to vector<8x1xf32>
    %89 = arith.addf %87, %88 : vector<8x1xf32>
    %90 = math.rsqrt %89 : vector<8x1xf32>
    %91 = vector.broadcast %90 : vector<8x1xf32> to vector<8x32xf32>
    %92 = arith.mulf %82, %91 : vector<8x32xf32>
    %93 = vector.broadcast %4 : vector<1x32xf32> to vector<8x32xf32>
    %94 = arith.mulf %92, %93 : vector<8x32xf32>
    %95 = vector.broadcast %5 : vector<1x32xf32> to vector<8x32xf32>
    %96 = arith.addf %94, %95 : vector<8x32xf32>
    %c0_47 = arith.constant 0 : index
    %c0_48 = arith.constant 0 : index
    %c0_49 = arith.constant 0 : index
    %97 = vector.load %arg10[%c0_47, %c0_48, %c0_49] : memref<1x8x32xf32, #tpu.memory_space<vmem>>, vector<1x8x32xf32>
    %98 = vector.shape_cast %97 : vector<1x8x32xf32> to vector<8x32xf32>
    %99 = vector.shape_cast %96 : vector<8x32xf32> to vector<1x8x32xf32>
    tpu.vector_store %arg10[%c0_47, %c0_48, %c0_49], %99 {strides = array<i32>} : memref<1x8x32xf32, #tpu.memory_space<vmem>>, vector<1x8x32xf32>,
    return
  }
  func.func @transform_0(%arg0: i32, %arg1: i32) -> (i32, i32, i32) {
    %c0_i32 = arith.constant 0 : i32
    %c0_i32_0 = arith.constant 0 : i32
    %c0_i32_1 = arith.constant 0 : i32
    return %arg0, %c0_i32, %c0_i32_0 : i32, i32, i32
  }
  func.func @transform_1(%arg0: i32, %arg1: i32) -> (i32, i32) {
    %c0_i32 = arith.constant 0 : i32
    %c0_i32_0 = arith.constant 0 : i32
    %c0_i32_1 = arith.constant 0 : i32
    return %c0_i32, %c0_i32_0 : i32, i32
  }
  func.func @transform_2(%arg0: i32, %arg1: i32) -> (i32, i32) {
    %c0_i32 = arith.constant 0 : i32
    %c0_i32_0 = arith.constant 0 : i32
    %c0_i32_1 = arith.constant 0 : i32
    return %c0_i32, %c0_i32_0 : i32, i32
  }
  func.func @transform_3(%arg0: i32, %arg1: i32) -> (i32, i32) {
    %c0_i32 = arith.constant 0 : i32
    %c0_i32_0 = arith.constant 0 : i32
    %c0_i32_1 = arith.constant 0 : i32
    return %c0_i32, %c0_i32_0 : i32, i32
  }
  func.func @transform_4(%arg0: i32, %arg1: i32) -> (i32, i32) {
    %c0_i32 = arith.constant 0 : i32
    %c0_i32_0 = arith.constant 0 : i32
    %c0_i32_1 = arith.constant 0 : i32
    return %c0_i32, %c0_i32_0 : i32, i32
  }
  func.func @transform_5(%arg0: i32, %arg1: i32) -> (i32, i32) {
    %c0_i32 = arith.constant 0 : i32
    %c0_i32_0 = arith.constant 0 : i32
    %c0_i32_1 = arith.constant 0 : i32
    return %c0_i32, %c0_i32_0 : i32, i32
  }
  func.func @transform_6(%arg0: i32, %arg1: i32) -> (i32, i32) {
    %c0_i32 = arith.constant 0 : i32
    %c0_i32_0 = arith.constant 0 : i32
    %c0_i32_1 = arith.constant 0 : i32
    return %c0_i32, %c0_i32_0 : i32, i32
  }
  func.func @transform_7(%arg0: i32, %arg1: i32) -> (i32, i32) {
    %c0_i32 = arith.constant 0 : i32
    %c0_i32_0 = arith.constant 0 : i32
    %c0_i32_1 = arith.constant 0 : i32
    return %c0_i32, %c0_i32_0 : i32, i32
  }
  func.func @transform_8(%arg0: i32, %arg1: i32) -> (i32, i32, i32) {
    %c0_i32 = arith.constant 0 : i32
    %c0_i32_0 = arith.constant 0 : i32
    return %arg0, %arg1, %c0_i32 : i32, i32, i32
  }
}

module attributes {stable_mosaic.version = 11 : i64} {
  func.func @kernel(%arg0: i32, %arg1: i32, %arg2: memref<1x8x32xf32, #tpu.memory_space<vmem>>, %arg3: memref<32x32xf32, #tpu.memory_space<vmem>>, %arg4: memref<64x32xf32, #tpu.memory_space<vmem>>, %arg5: memref<32x32xf32, #tpu.memory_space<vmem>>, %arg6: memref<32x64xf32, #tpu.memory_space<vmem>>, %arg7: memref<64x32xf32, #tpu.memory_space<vmem>>, %arg8: memref<1x64xf32, #tpu.memory_space<vmem>>, %arg9: memref<8x32xf32, #tpu.memory_space<vmem>>, %arg10: memref<1x8x32xf32, #tpu.memory_space<vmem>>, %arg11: memref<2x4x8x8xf32, #tpu.memory_space<vmem>>) attributes {dimension_semantics = [#tpu.dimension_semantics<parallel>, #tpu.dimension_semantics<arbitrary>], iteration_bounds = array<i64: 2, 1>, scalar_prefetch = 0 : i64, scratch_operands = 1 : i64, tpu.core_type = #tpu.core_type<tc>, window_params = [{transform_indices = @transform_0, window_bounds = array<i64: 1, 8, 32>}, {pipeline_mode = #tpu.pipeline_mode<synchronous>, transform_indices = @transform_1, window_bounds = array<i64: 32, 32>}, {pipeline_mode = #tpu.pipeline_mode<synchronous>, transform_indices = @transform_2, window_bounds = array<i64: 64, 32>}, {pipeline_mode = #tpu.pipeline_mode<synchronous>, transform_indices = @transform_3, window_bounds = array<i64: 32, 32>}, {pipeline_mode = #tpu.pipeline_mode<synchronous>, transform_indices = @transform_4, window_bounds = array<i64: 32, 64>}, {pipeline_mode = #tpu.pipeline_mode<synchronous>, transform_indices = @transform_5, window_bounds = array<i64: 64, 32>}, {pipeline_mode = #tpu.pipeline_mode<synchronous>, transform_indices = @transform_6, window_bounds = array<i64: 1, 64>}, {pipeline_mode = #tpu.pipeline_mode<synchronous>, transform_indices = @transform_7, window_bounds = array<i64: 8, 32>}, {transform_indices = @transform_8, window_bounds = array<i64: 1, 8, 32>}]} {
    %c0 = arith.constant 0 : index
    %c0_0 = arith.constant 0 : index
    %0 = vector.load %arg9[%c0, %c0_0] : memref<8x32xf32, #tpu.memory_space<vmem>>, vector<1x32xf32>
    %c1 = arith.constant 1 : index
    %c0_1 = arith.constant 0 : index
    %1 = vector.load %arg9[%c1, %c0_1] : memref<8x32xf32, #tpu.memory_space<vmem>>, vector<1x32xf32>
    %c2 = arith.constant 2 : index
    %c0_2 = arith.constant 0 : index
    %2 = vector.load %arg9[%c2, %c0_2] : memref<8x32xf32, #tpu.memory_space<vmem>>, vector<1x32xf32>
    %c3 = arith.constant 3 : index
    %c0_3 = arith.constant 0 : index
    %3 = vector.load %arg9[%c3, %c0_3] : memref<8x32xf32, #tpu.memory_space<vmem>>, vector<1x32xf32>
    %c4 = arith.constant 4 : index
    %c0_4 = arith.constant 0 : index
    %4 = vector.load %arg9[%c4, %c0_4] : memref<8x32xf32, #tpu.memory_space<vmem>>, vector<1x32xf32>
    %c5 = arith.constant 5 : index
    %c0_5 = arith.constant 0 : index
    %5 = vector.load %arg9[%c5, %c0_5] : memref<8x32xf32, #tpu.memory_space<vmem>>, vector<1x32xf32>
    %c0_i32 = arith.constant 0 : i32
    %6 = arith.cmpi eq, %arg1, %c0_i32 : i32
    %7 = arith.extui %6 : i1 to i32
    %c0_i32_6 = arith.constant 0 : i32
    %8 = arith.cmpi ne, %7, %c0_i32_6 : i32
    scf.if %8 {
      %c0_50 = arith.constant 0 : index
      %c0_51 = arith.constant 0 : index
      %c0_52 = arith.constant 0 : index
      %100 = vector.load %arg2[%c0_50, %c0_51, %c0_52] : memref<1x8x32xf32, #tpu.memory_space<vmem>>, vector<1x8x32xf32>
      %101 = vector.shape_cast %100 : vector<1x8x32xf32> to vector<8x32xf32>
      %c0_53 = arith.constant 0 : index
      %c0_54 = arith.constant 0 : index
      %102 = vector.load %arg4[%c0_53, %c0_54] : memref<64x32xf32, #tpu.memory_space<vmem>>, vector<64x32xf32>
      %cst_55 = arith.constant dense<0.000000e+00> : vector<64x8xf32>
      %103 = tpu.matmul %102, %101, %cst_55 {dimension_numbers = #tpu.dot_dimension_numbers<[1], [1], [0], [0], [0, 0, 1, 0], [], []>} : vector<64x32xf32>, vector<8x32xf32>, vector<64x8xf32> -> vector<64x8xf32>
      %104 = vector.shape_cast %103 : vector<64x8xf32> to vector<2x4x8x8xf32>
      %c0_56 = arith.constant 0 : index
      %c0_57 = arith.constant 0 : index
      %c0_58 = arith.constant 0 : index
      %c0_59 = arith.constant 0 : index
      %105 = vector.load %arg11[%c0_56, %c0_57, %c0_58, %c0_59] : memref<2x4x8x8xf32, #tpu.memory_space<vmem>>, vector<2x4x8x8xf32>
      tpu.vector_store %arg11[%c0_56, %c0_57, %c0_58, %c0_59], %104 {strides = array<i32>} : memref<2x4x8x8xf32, #tpu.memory_space<vmem>>, vector<2x4x8x8xf32>,
    } else {
    }
    %c8_i32 = arith.constant 8 : i32
    %9 = arith.muli %arg1, %c8_i32 : i32
    %10 = tpu.assume_multiple %9, 8 : i32
    %c0_7 = arith.constant 0 : index
    %11 = arith.index_cast %10 : i32 to index
    %c0_8 = arith.constant 0 : index
    %12 = vector.load %arg2[%c0_7, %11, %c0_8] : memref<1x8x32xf32, #tpu.memory_space<vmem>>, vector<1x8x32xf32>
    %13 = vector.shape_cast %12 : vector<1x8x32xf32> to vector<8x32xf32>
    %c0_9 = arith.constant 0 : index
    %c0_10 = arith.constant 0 : index
    %14 = vector.load %arg3[%c0_9, %c0_10] : memref<32x32xf32, #tpu.memory_space<vmem>>, vector<32x32xf32>
    %cst = arith.constant dense<0.000000e+00> : vector<32x8xf32>
    %15 = tpu.matmul %14, %13, %cst {dimension_numbers = #tpu.dot_dimension_numbers<[1], [1], [0], [0], [0, 0, 1, 0], [], []>} : vector<32x32xf32>, vector<8x32xf32>, vector<32x8xf32> -> vector<32x8xf32>
    %16 = vector.shape_cast %15 : vector<32x8xf32> to vector<4x8x8xf32>
    %c0_11 = arith.constant 0 : index
    %c0_12 = arith.constant 0 : index
    %c0_13 = arith.constant 0 : index
    %c0_14 = arith.constant 0 : index
    %17 = vector.load %arg11[%c0_11, %c0_12, %c0_13, %c0_14] : memref<2x4x8x8xf32, #tpu.memory_space<vmem>>, vector<1x4x8x8xf32>
    %18 = vector.shape_cast %17 : vector<1x4x8x8xf32> to vector<4x8x8xf32>
    %c1_15 = arith.constant 1 : index
    %c0_16 = arith.constant 0 : index
    %c0_17 = arith.constant 0 : index
    %c0_18 = arith.constant 0 : index
    %19 = vector.load %arg11[%c1_15, %c0_16, %c0_17, %c0_18] : memref<2x4x8x8xf32, #tpu.memory_space<vmem>>, vector<1x4x8x8xf32>
    %20 = vector.shape_cast %19 : vector<1x4x8x8xf32> to vector<4x8x8xf32>
    %cst_19 = arith.constant dense<0.000000e+00> : vector<4x8x8xf32>
    %21 = tpu.matmul %16, %18, %cst_19 {dimension_numbers = #tpu.dot_dimension_numbers<[1], [1], [2], [2], [0, 0, 0, 2, 1, 2], [0], [0]>} : vector<4x8x8xf32>, vector<4x8x8xf32>, vector<4x8x8xf32> -> vector<4x8x8xf32>
    %cst_20 = arith.constant dense<0xFF800000> : vector<4x8xf32>
    %22 = vector.multi_reduction <maximumf>, %21, %cst_20 [2] : vector<4x8x8xf32> to vector<4x8xf32>
    %23 = vector.shape_cast %22 : vector<4x8xf32> to vector<4x8x1xf32>
    %24 = vector.broadcast %23 : vector<4x8x1xf32> to vector<4x8x8xf32>
    %25 = arith.subf %21, %24 : vector<4x8x8xf32>
    %26 = math.exp %25 : vector<4x8x8xf32>
    %cst_21 = arith.constant dense<0.000000e+00> : vector<4x8xf32>
    %27 = vector.multi_reduction <add>, %26, %cst_21 [2] : vector<4x8x8xf32> to vector<4x8xf32>
    %cst_22 = arith.constant dense<0.000000e+00> : vector<4x8x8xf32>
    %28 = tpu.matmul %20, %26, %cst_22 {dimension_numbers = #tpu.dot_dimension_numbers<[2], [2], [1], [1], [0, 0, 0, 1, 1, 1], [0], [0]>} : vector<4x8x8xf32>, vector<4x8x8xf32>, vector<4x8x8xf32> -> vector<4x8x8xf32>
    %29 = tpu.reciprocal %27 : vector<4x8xf32> -> vector<4x8xf32>
    %30 = vector.shape_cast %29 : vector<4x8xf32> to vector<4x1x8xf32>
    %31 = vector.broadcast %30 : vector<4x1x8xf32> to vector<4x8x8xf32>
    %32 = arith.mulf %28, %31 : vector<4x8x8xf32>
    %33 = vector.shape_cast %32 : vector<4x8x8xf32> to vector<32x8xf32>
    %c0_23 = arith.constant 0 : index
    %c0_24 = arith.constant 0 : index
    %34 = vector.load %arg5[%c0_23, %c0_24] : memref<32x32xf32, #tpu.memory_space<vmem>>, vector<32x32xf32>
    %cst_25 = arith.constant dense<0.000000e+00> : vector<8x32xf32>
    %35 = tpu.matmul %33, %34, %cst_25 {dimension_numbers = #tpu.dot_dimension_numbers<[0], [0], [1], [1], [0, 1, 1, 1], [], []>} : vector<32x8xf32>, vector<32x32xf32>, vector<8x32xf32> -> vector<8x32xf32>
    %36 = vector.broadcast %0 : vector<1x32xf32> to vector<8x32xf32>
    %37 = arith.addf %35, %36 : vector<8x32xf32>
    %38 = arith.addf %13, %37 : vector<8x32xf32>
    %cst_26 = arith.constant dense<0.000000e+00> : vector<8xf32>
    %39 = vector.multi_reduction <add>, %38, %cst_26 [1] : vector<8x32xf32> to vector<8xf32>
    %40 = vector.shape_cast %39 : vector<8xf32> to vector<8x1xf32>
    %cst_27 = arith.constant 3.200000e+01 : f32
    %41 = vector.broadcast %cst_27 : f32 to vector<8x1xf32>
    %42 = arith.divf %40, %41 : vector<8x1xf32>
    %43 = vector.broadcast %42 : vector<8x1xf32> to vector<8x32xf32>
    %44 = arith.subf %38, %43 : vector<8x32xf32>
    %45 = arith.mulf %44, %44 : vector<8x32xf32>
    %cst_28 = arith.constant dense<0.000000e+00> : vector<8xf32>
    %46 = vector.multi_reduction <add>, %45, %cst_28 [1] : vector<8x32xf32> to vector<8xf32>
    %47 = vector.shape_cast %46 : vector<8xf32> to vector<8x1xf32>
    %cst_29 = arith.constant 3.200000e+01 : f32
    %48 = vector.broadcast %cst_29 : f32 to vector<8x1xf32>
    %49 = arith.divf %47, %48 : vector<8x1xf32>
    %cst_30 = arith.constant 9.99999974E-6 : f32
    %50 = vector.broadcast %cst_30 : f32 to vector<8x1xf32>
    %51 = arith.addf %49, %50 : vector<8x1xf32>
    %52 = math.rsqrt %51 : vector<8x1xf32>
    %53 = vector.broadcast %52 : vector<8x1xf32> to vector<8x32xf32>
    %54 = arith.mulf %44, %53 : vector<8x32xf32>
    %55 = vector.broadcast %1 : vector<1x32xf32> to vector<8x32xf32>
    %56 = arith.mulf %54, %55 : vector<8x32xf32>
    %57 = vector.broadcast %2 : vector<1x32xf32> to vector<8x32xf32>
    %58 = arith.addf %56, %57 : vector<8x32xf32>
    %c0_31 = arith.constant 0 : index
    %c0_32 = arith.constant 0 : index
    %59 = vector.load %arg6[%c0_31, %c0_32] : memref<32x64xf32, #tpu.memory_space<vmem>>, vector<32x64xf32>
    %cst_33 = arith.constant dense<0.000000e+00> : vector<8x64xf32>
    %60 = tpu.matmul %58, %59, %cst_33 {dimension_numbers = #tpu.dot_dimension_numbers<[1], [0], [0], [1], [0, 0, 1, 1], [], []>} : vector<8x32xf32>, vector<32x64xf32>, vector<8x64xf32> -> vector<8x64xf32>
    %c0_34 = arith.constant 0 : index
    %c0_35 = arith.constant 0 : index
    %61 = vector.load %arg8[%c0_34, %c0_35] : memref<1x64xf32, #tpu.memory_space<vmem>>, vector<1x64xf32>
    %62 = vector.broadcast %61 : vector<1x64xf32> to vector<8x64xf32>
    %63 = arith.addf %60, %62 : vector<8x64xf32>
    %cst_36 = arith.constant 5.000000e-01 : f32
    %64 = vector.broadcast %cst_36 : f32 to vector<8x64xf32>
    %65 = arith.mulf %64, %63 : vector<8x64xf32>
    %cst_37 = arith.constant 0.707106769 : f32
    %66 = vector.broadcast %cst_37 : f32 to vector<8x64xf32>
    %67 = arith.mulf %63, %66 : vector<8x64xf32>
    %68 = math.erf %67 : vector<8x64xf32>
    %cst_38 = arith.constant 1.000000e+00 : f32
    %69 = vector.broadcast %cst_38 : f32 to vector<8x64xf32>
    %70 = arith.addf %69, %68 : vector<8x64xf32>
    %71 = arith.mulf %65, %70 : vector<8x64xf32>
    %c0_39 = arith.constant 0 : index
    %c0_40 = arith.constant 0 : index
    %72 = vector.load %arg7[%c0_39, %c0_40] : memref<64x32xf32, #tpu.memory_space<vmem>>, vector<64x32xf32>
    %cst_41 = arith.constant dense<0.000000e+00> : vector<8x32xf32>
    %73 = tpu.matmul %71, %72, %cst_41 {dimension_numbers = #tpu.dot_dimension_numbers<[1], [0], [0], [1], [0, 0, 1, 1], [], []>} : vector<8x64xf32>, vector<64x32xf32>, vector<8x32xf32> -> vector<8x32xf32>
    %74 = vector.broadcast %3 : vector<1x32xf32> to vector<8x32xf32>
    %75 = arith.addf %73, %74 : vector<8x32xf32>
    %76 = arith.addf %38, %75 : vector<8x32xf32>
    %cst_42 = arith.constant dense<0.000000e+00> : vector<8xf32>
    %77 = vector.multi_reduction <add>, %76, %cst_42 [1] : vector<8x32xf32> to vector<8xf32>
    %78 = vector.shape_cast %77 : vector<8xf32> to vector<8x1xf32>
    %cst_43 = arith.constant 3.200000e+01 : f32
    %79 = vector.broadcast %cst_43 : f32 to vector<8x1xf32>
    %80 = arith.divf %78, %79 : vector<8x1xf32>
    %81 = vector.broadcast %80 : vector<8x1xf32> to vector<8x32xf32>
    %82 = arith.subf %76, %81 : vector<8x32xf32>
    %83 = arith.mulf %82, %82 : vector<8x32xf32>
    %cst_44 = arith.constant dense<0.000000e+00> : vector<8xf32>
    %84 = vector.multi_reduction <add>, %83, %cst_44 [1] : vector<8x32xf32> to vector<8xf32>
    %85 = vector.shape_cast %84 : vector<8xf32> to vector<8x1xf32>
    %cst_45 = arith.constant 3.200000e+01 : f32
    %86 = vector.broadcast %cst_45 : f32 to vector<8x1xf32>
    %87 = arith.divf %85, %86 : vector<8x1xf32>
    %cst_46 = arith.constant 9.99999974E-6 : f32
    %88 = vector.broadcast %cst_46 : f32 to vector<8x1xf32>
    %89 = arith.addf %87, %88 : vector<8x1xf32>
    %90 = math.rsqrt %89 : vector<8x1xf32>
    %91 = vector.broadcast %90 : vector<8x1xf32> to vector<8x32xf32>
    %92 = arith.mulf %82, %91 : vector<8x32xf32>
    %93 = vector.broadcast %4 : vector<1x32xf32> to vector<8x32xf32>
    %94 = arith.mulf %92, %93 : vector<8x32xf32>
    %95 = vector.broadcast %5 : vector<1x32xf32> to vector<8x32xf32>
    %96 = arith.addf %94, %95 : vector<8x32xf32>
    %c0_47 = arith.constant 0 : index
    %c0_48 = arith.constant 0 : index
    %c0_49 = arith.constant 0 : index
    %97 = vector.load %arg10[%c0_47, %c0_48, %c0_49] : memref<1x8x32xf32, #tpu.memory_space<vmem>>, vector<1x8x32xf32>
    %98 = vector.shape_cast %97 : vector<1x8x32xf32> to vector<8x32xf32>
    %99 = vector.shape_cast %96 : vector<8x32xf32> to vector<1x8x32xf32>
    tpu.vector_store %arg10[%c0_47, %c0_48, %c0_49], %99 {strides = array<i32>} : memref<1x8x32xf32, #tpu.memory_space<vmem>>, vector<1x8x32xf32>,
    return
  }
  func.func @transform_0(%arg0: i32, %arg1: i32) -> (i32, i32, i32) {
    %c0_i32 = arith.constant 0 : i32
    %c0_i32_0 = arith.constant 0 : i32
    %c0_i32_1 = arith.constant 0 : i32
    return %arg0, %c0_i32, %c0_i32_0 : i32, i32, i32
  }
  func.func @transform_1(%arg0: i32, %arg1: i32) -> (i32, i32) {
    %c0_i32 = arith.constant 0 : i32
    %c0_i32_0 = arith.constant 0 : i32
    %c0_i32_1 = arith.constant 0 : i32
    return %c0_i32, %c0_i32_0 : i32, i32
  }
  func.func @transform_2(%arg0: i32, %arg1: i32) -> (i32, i32) {
    %c0_i32 = arith.constant 0 : i32
    %c0_i32_0 = arith.constant 0 : i32
    %c0_i32_1 = arith.constant 0 : i32
    return %c0_i32, %c0_i32_0 : i32, i32
  }
  func.func @transform_3(%arg0: i32, %arg1: i32) -> (i32, i32) {
    %c0_i32 = arith.constant 0 : i32
    %c0_i32_0 = arith.constant 0 : i32
    %c0_i32_1 = arith.constant 0 : i32
    return %c0_i32, %c0_i32_0 : i32, i32
  }
  func.func @transform_4(%arg0: i32, %arg1: i32) -> (i32, i32) {
    %c0_i32 = arith.constant 0 : i32
    %c0_i32_0 = arith.constant 0 : i32
    %c0_i32_1 = arith.constant 0 : i32
    return %c0_i32, %c0_i32_0 : i32, i32
  }
  func.func @transform_5(%arg0: i32, %arg1: i32) -> (i32, i32) {
    %c0_i32 = arith.constant 0 : i32
    %c0_i32_0 = arith.constant 0 : i32
    %c0_i32_1 = arith.constant 0 : i32
    return %c0_i32, %c0_i32_0 : i32, i32
  }
  func.func @transform_6(%arg0: i32, %arg1: i32) -> (i32, i32) {
    %c0_i32 = arith.constant 0 : i32
    %c0_i32_0 = arith.constant 0 : i32
    %c0_i32_1 = arith.constant 0 : i32
    return %c0_i32, %c0_i32_0 : i32, i32
  }
  func.func @transform_7(%arg0: i32, %arg1: i32) -> (i32, i32) {
    %c0_i32 = arith.constant 0 : i32
    %c0_i32_0 = arith.constant 0 : i32
    %c0_i32_1 = arith.constant 0 : i32
    return %c0_i32, %c0_i32_0 : i32, i32
  }
  func.func @transform_8(%arg0: i32, %arg1: i32) -> (i32, i32, i32) {
    %c0_i32 = arith.constant 0 : i32
    %c0_i32_0 = arith.constant 0 : i32
    return %arg0, %arg1, %c0_i32 : i32, i32, i32
  }
}

module attributes {stable_mosaic.version = 11 : i64} {
  func.func @kernel(%arg0: i32, %arg1: i32, %arg2: memref<1x8x32xf32, #tpu.memory_space<vmem>>, %arg3: memref<32x32xf32, #tpu.memory_space<vmem>>, %arg4: memref<64x32xf32, #tpu.memory_space<vmem>>, %arg5: memref<32x32xf32, #tpu.memory_space<vmem>>, %arg6: memref<32x64xf32, #tpu.memory_space<vmem>>, %arg7: memref<64x32xf32, #tpu.memory_space<vmem>>, %arg8: memref<1x64xf32, #tpu.memory_space<vmem>>, %arg9: memref<8x32xf32, #tpu.memory_space<vmem>>, %arg10: memref<1x8x32xf32, #tpu.memory_space<vmem>>, %arg11: memref<2x4x8x8xf32, #tpu.memory_space<vmem>>) attributes {dimension_semantics = [#tpu.dimension_semantics<parallel>, #tpu.dimension_semantics<arbitrary>], iteration_bounds = array<i64: 2, 1>, scalar_prefetch = 0 : i64, scratch_operands = 1 : i64, tpu.core_type = #tpu.core_type<tc>, window_params = [{transform_indices = @transform_0, window_bounds = array<i64: 1, 8, 32>}, {pipeline_mode = #tpu.pipeline_mode<synchronous>, transform_indices = @transform_1, window_bounds = array<i64: 32, 32>}, {pipeline_mode = #tpu.pipeline_mode<synchronous>, transform_indices = @transform_2, window_bounds = array<i64: 64, 32>}, {pipeline_mode = #tpu.pipeline_mode<synchronous>, transform_indices = @transform_3, window_bounds = array<i64: 32, 32>}, {pipeline_mode = #tpu.pipeline_mode<synchronous>, transform_indices = @transform_4, window_bounds = array<i64: 32, 64>}, {pipeline_mode = #tpu.pipeline_mode<synchronous>, transform_indices = @transform_5, window_bounds = array<i64: 64, 32>}, {pipeline_mode = #tpu.pipeline_mode<synchronous>, transform_indices = @transform_6, window_bounds = array<i64: 1, 64>}, {pipeline_mode = #tpu.pipeline_mode<synchronous>, transform_indices = @transform_7, window_bounds = array<i64: 8, 32>}, {transform_indices = @transform_8, window_bounds = array<i64: 1, 8, 32>}]} {
    %c0 = arith.constant 0 : index
    %c0_0 = arith.constant 0 : index
    %0 = vector.load %arg9[%c0, %c0_0] : memref<8x32xf32, #tpu.memory_space<vmem>>, vector<1x32xf32>
    %c1 = arith.constant 1 : index
    %c0_1 = arith.constant 0 : index
    %1 = vector.load %arg9[%c1, %c0_1] : memref<8x32xf32, #tpu.memory_space<vmem>>, vector<1x32xf32>
    %c2 = arith.constant 2 : index
    %c0_2 = arith.constant 0 : index
    %2 = vector.load %arg9[%c2, %c0_2] : memref<8x32xf32, #tpu.memory_space<vmem>>, vector<1x32xf32>
    %c3 = arith.constant 3 : index
    %c0_3 = arith.constant 0 : index
    %3 = vector.load %arg9[%c3, %c0_3] : memref<8x32xf32, #tpu.memory_space<vmem>>, vector<1x32xf32>
    %c4 = arith.constant 4 : index
    %c0_4 = arith.constant 0 : index
    %4 = vector.load %arg9[%c4, %c0_4] : memref<8x32xf32, #tpu.memory_space<vmem>>, vector<1x32xf32>
    %c5 = arith.constant 5 : index
    %c0_5 = arith.constant 0 : index
    %5 = vector.load %arg9[%c5, %c0_5] : memref<8x32xf32, #tpu.memory_space<vmem>>, vector<1x32xf32>
    %c0_i32 = arith.constant 0 : i32
    %6 = arith.cmpi eq, %arg1, %c0_i32 : i32
    %7 = arith.extui %6 : i1 to i32
    %c0_i32_6 = arith.constant 0 : i32
    %8 = arith.cmpi ne, %7, %c0_i32_6 : i32
    scf.if %8 {
      %c0_50 = arith.constant 0 : index
      %c0_51 = arith.constant 0 : index
      %c0_52 = arith.constant 0 : index
      %100 = vector.load %arg2[%c0_50, %c0_51, %c0_52] : memref<1x8x32xf32, #tpu.memory_space<vmem>>, vector<1x8x32xf32>
      %101 = vector.shape_cast %100 : vector<1x8x32xf32> to vector<8x32xf32>
      %c0_53 = arith.constant 0 : index
      %c0_54 = arith.constant 0 : index
      %102 = vector.load %arg4[%c0_53, %c0_54] : memref<64x32xf32, #tpu.memory_space<vmem>>, vector<64x32xf32>
      %cst_55 = arith.constant dense<0.000000e+00> : vector<64x8xf32>
      %103 = tpu.matmul %102, %101, %cst_55 {dimension_numbers = #tpu.dot_dimension_numbers<[1], [1], [0], [0], [0, 0, 1, 0], [], []>} : vector<64x32xf32>, vector<8x32xf32>, vector<64x8xf32> -> vector<64x8xf32>
      %104 = vector.shape_cast %103 : vector<64x8xf32> to vector<2x4x8x8xf32>
      %c0_56 = arith.constant 0 : index
      %c0_57 = arith.constant 0 : index
      %c0_58 = arith.constant 0 : index
      %c0_59 = arith.constant 0 : index
      %105 = vector.load %arg11[%c0_56, %c0_57, %c0_58, %c0_59] : memref<2x4x8x8xf32, #tpu.memory_space<vmem>>, vector<2x4x8x8xf32>
      tpu.vector_store %arg11[%c0_56, %c0_57, %c0_58, %c0_59], %104 {strides = array<i32>} : memref<2x4x8x8xf32, #tpu.memory_space<vmem>>, vector<2x4x8x8xf32>,
    } else {
    }
    %c8_i32 = arith.constant 8 : i32
    %9 = arith.muli %arg1, %c8_i32 : i32
    %10 = tpu.assume_multiple %9, 8 : i32
    %c0_7 = arith.constant 0 : index
    %11 = arith.index_cast %10 : i32 to index
    %c0_8 = arith.constant 0 : index
    %12 = vector.load %arg2[%c0_7, %11, %c0_8] : memref<1x8x32xf32, #tpu.memory_space<vmem>>, vector<1x8x32xf32>
    %13 = vector.shape_cast %12 : vector<1x8x32xf32> to vector<8x32xf32>
    %c0_9 = arith.constant 0 : index
    %c0_10 = arith.constant 0 : index
    %14 = vector.load %arg3[%c0_9, %c0_10] : memref<32x32xf32, #tpu.memory_space<vmem>>, vector<32x32xf32>
    %cst = arith.constant dense<0.000000e+00> : vector<32x8xf32>
    %15 = tpu.matmul %14, %13, %cst {dimension_numbers = #tpu.dot_dimension_numbers<[1], [1], [0], [0], [0, 0, 1, 0], [], []>} : vector<32x32xf32>, vector<8x32xf32>, vector<32x8xf32> -> vector<32x8xf32>
    %16 = vector.shape_cast %15 : vector<32x8xf32> to vector<4x8x8xf32>
    %c0_11 = arith.constant 0 : index
    %c0_12 = arith.constant 0 : index
    %c0_13 = arith.constant 0 : index
    %c0_14 = arith.constant 0 : index
    %17 = vector.load %arg11[%c0_11, %c0_12, %c0_13, %c0_14] : memref<2x4x8x8xf32, #tpu.memory_space<vmem>>, vector<1x4x8x8xf32>
    %18 = vector.shape_cast %17 : vector<1x4x8x8xf32> to vector<4x8x8xf32>
    %c1_15 = arith.constant 1 : index
    %c0_16 = arith.constant 0 : index
    %c0_17 = arith.constant 0 : index
    %c0_18 = arith.constant 0 : index
    %19 = vector.load %arg11[%c1_15, %c0_16, %c0_17, %c0_18] : memref<2x4x8x8xf32, #tpu.memory_space<vmem>>, vector<1x4x8x8xf32>
    %20 = vector.shape_cast %19 : vector<1x4x8x8xf32> to vector<4x8x8xf32>
    %cst_19 = arith.constant dense<0.000000e+00> : vector<4x8x8xf32>
    %21 = tpu.matmul %16, %18, %cst_19 {dimension_numbers = #tpu.dot_dimension_numbers<[1], [1], [2], [2], [0, 0, 0, 2, 1, 2], [0], [0]>} : vector<4x8x8xf32>, vector<4x8x8xf32>, vector<4x8x8xf32> -> vector<4x8x8xf32>
    %cst_20 = arith.constant dense<0xFF800000> : vector<4x8xf32>
    %22 = vector.multi_reduction <maximumf>, %21, %cst_20 [2] : vector<4x8x8xf32> to vector<4x8xf32>
    %23 = vector.shape_cast %22 : vector<4x8xf32> to vector<4x8x1xf32>
    %24 = vector.broadcast %23 : vector<4x8x1xf32> to vector<4x8x8xf32>
    %25 = arith.subf %21, %24 : vector<4x8x8xf32>
    %26 = math.exp %25 : vector<4x8x8xf32>
    %cst_21 = arith.constant dense<0.000000e+00> : vector<4x8xf32>
    %27 = vector.multi_reduction <add>, %26, %cst_21 [2] : vector<4x8x8xf32> to vector<4x8xf32>
    %cst_22 = arith.constant dense<0.000000e+00> : vector<4x8x8xf32>
    %28 = tpu.matmul %20, %26, %cst_22 {dimension_numbers = #tpu.dot_dimension_numbers<[2], [2], [1], [1], [0, 0, 0, 1, 1, 1], [0], [0]>} : vector<4x8x8xf32>, vector<4x8x8xf32>, vector<4x8x8xf32> -> vector<4x8x8xf32>
    %29 = tpu.reciprocal %27 : vector<4x8xf32> -> vector<4x8xf32>
    %30 = vector.shape_cast %29 : vector<4x8xf32> to vector<4x1x8xf32>
    %31 = vector.broadcast %30 : vector<4x1x8xf32> to vector<4x8x8xf32>
    %32 = arith.mulf %28, %31 : vector<4x8x8xf32>
    %33 = vector.shape_cast %32 : vector<4x8x8xf32> to vector<32x8xf32>
    %c0_23 = arith.constant 0 : index
    %c0_24 = arith.constant 0 : index
    %34 = vector.load %arg5[%c0_23, %c0_24] : memref<32x32xf32, #tpu.memory_space<vmem>>, vector<32x32xf32>
    %cst_25 = arith.constant dense<0.000000e+00> : vector<8x32xf32>
    %35 = tpu.matmul %33, %34, %cst_25 {dimension_numbers = #tpu.dot_dimension_numbers<[0], [0], [1], [1], [0, 1, 1, 1], [], []>} : vector<32x8xf32>, vector<32x32xf32>, vector<8x32xf32> -> vector<8x32xf32>
    %36 = vector.broadcast %0 : vector<1x32xf32> to vector<8x32xf32>
    %37 = arith.addf %35, %36 : vector<8x32xf32>
    %38 = arith.addf %13, %37 : vector<8x32xf32>
    %cst_26 = arith.constant dense<0.000000e+00> : vector<8xf32>
    %39 = vector.multi_reduction <add>, %38, %cst_26 [1] : vector<8x32xf32> to vector<8xf32>
    %40 = vector.shape_cast %39 : vector<8xf32> to vector<8x1xf32>
    %cst_27 = arith.constant 3.200000e+01 : f32
    %41 = vector.broadcast %cst_27 : f32 to vector<8x1xf32>
    %42 = arith.divf %40, %41 : vector<8x1xf32>
    %43 = vector.broadcast %42 : vector<8x1xf32> to vector<8x32xf32>
    %44 = arith.subf %38, %43 : vector<8x32xf32>
    %45 = arith.mulf %44, %44 : vector<8x32xf32>
    %cst_28 = arith.constant dense<0.000000e+00> : vector<8xf32>
    %46 = vector.multi_reduction <add>, %45, %cst_28 [1] : vector<8x32xf32> to vector<8xf32>
    %47 = vector.shape_cast %46 : vector<8xf32> to vector<8x1xf32>
    %cst_29 = arith.constant 3.200000e+01 : f32
    %48 = vector.broadcast %cst_29 : f32 to vector<8x1xf32>
    %49 = arith.divf %47, %48 : vector<8x1xf32>
    %cst_30 = arith.constant 9.99999974E-6 : f32
    %50 = vector.broadcast %cst_30 : f32 to vector<8x1xf32>
    %51 = arith.addf %49, %50 : vector<8x1xf32>
    %52 = math.rsqrt %51 : vector<8x1xf32>
    %53 = vector.broadcast %52 : vector<8x1xf32> to vector<8x32xf32>
    %54 = arith.mulf %44, %53 : vector<8x32xf32>
    %55 = vector.broadcast %1 : vector<1x32xf32> to vector<8x32xf32>
    %56 = arith.mulf %54, %55 : vector<8x32xf32>
    %57 = vector.broadcast %2 : vector<1x32xf32> to vector<8x32xf32>
    %58 = arith.addf %56, %57 : vector<8x32xf32>
    %c0_31 = arith.constant 0 : index
    %c0_32 = arith.constant 0 : index
    %59 = vector.load %arg6[%c0_31, %c0_32] : memref<32x64xf32, #tpu.memory_space<vmem>>, vector<32x64xf32>
    %cst_33 = arith.constant dense<0.000000e+00> : vector<8x64xf32>
    %60 = tpu.matmul %58, %59, %cst_33 {dimension_numbers = #tpu.dot_dimension_numbers<[1], [0], [0], [1], [0, 0, 1, 1], [], []>} : vector<8x32xf32>, vector<32x64xf32>, vector<8x64xf32> -> vector<8x64xf32>
    %c0_34 = arith.constant 0 : index
    %c0_35 = arith.constant 0 : index
    %61 = vector.load %arg8[%c0_34, %c0_35] : memref<1x64xf32, #tpu.memory_space<vmem>>, vector<1x64xf32>
    %62 = vector.broadcast %61 : vector<1x64xf32> to vector<8x64xf32>
    %63 = arith.addf %60, %62 : vector<8x64xf32>
    %cst_36 = arith.constant 5.000000e-01 : f32
    %64 = vector.broadcast %cst_36 : f32 to vector<8x64xf32>
    %65 = arith.mulf %64, %63 : vector<8x64xf32>
    %cst_37 = arith.constant 0.707106769 : f32
    %66 = vector.broadcast %cst_37 : f32 to vector<8x64xf32>
    %67 = arith.mulf %63, %66 : vector<8x64xf32>
    %68 = math.erf %67 : vector<8x64xf32>
    %cst_38 = arith.constant 1.000000e+00 : f32
    %69 = vector.broadcast %cst_38 : f32 to vector<8x64xf32>
    %70 = arith.addf %69, %68 : vector<8x64xf32>
    %71 = arith.mulf %65, %70 : vector<8x64xf32>
    %c0_39 = arith.constant 0 : index
    %c0_40 = arith.constant 0 : index
    %72 = vector.load %arg7[%c0_39, %c0_40] : memref<64x32xf32, #tpu.memory_space<vmem>>, vector<64x32xf32>
    %cst_41 = arith.constant dense<0.000000e+00> : vector<8x32xf32>
    %73 = tpu.matmul %71, %72, %cst_41 {dimension_numbers = #tpu.dot_dimension_numbers<[1], [0], [0], [1], [0, 0, 1, 1], [], []>} : vector<8x64xf32>, vector<64x32xf32>, vector<8x32xf32> -> vector<8x32xf32>
    %74 = vector.broadcast %3 : vector<1x32xf32> to vector<8x32xf32>
    %75 = arith.addf %73, %74 : vector<8x32xf32>
    %76 = arith.addf %38, %75 : vector<8x32xf32>
    %cst_42 = arith.constant dense<0.000000e+00> : vector<8xf32>
    %77 = vector.multi_reduction <add>, %76, %cst_42 [1] : vector<8x32xf32> to vector<8xf32>
    %78 = vector.shape_cast %77 : vector<8xf32> to vector<8x1xf32>
    %cst_43 = arith.constant 3.200000e+01 : f32
    %79 = vector.broadcast %cst_43 : f32 to vector<8x1xf32>
    %80 = arith.divf %78, %79 : vector<8x1xf32>
    %81 = vector.broadcast %80 : vector<8x1xf32> to vector<8x32xf32>
    %82 = arith.subf %76, %81 : vector<8x32xf32>
    %83 = arith.mulf %82, %82 : vector<8x32xf32>
    %cst_44 = arith.constant dense<0.000000e+00> : vector<8xf32>
    %84 = vector.multi_reduction <add>, %83, %cst_44 [1] : vector<8x32xf32> to vector<8xf32>
    %85 = vector.shape_cast %84 : vector<8xf32> to vector<8x1xf32>
    %cst_45 = arith.constant 3.200000e+01 : f32
    %86 = vector.broadcast %cst_45 : f32 to vector<8x1xf32>
    %87 = arith.divf %85, %86 : vector<8x1xf32>
    %cst_46 = arith.constant 9.99999974E-6 : f32
    %88 = vector.broadcast %cst_46 : f32 to vector<8x1xf32>
    %89 = arith.addf %87, %88 : vector<8x1xf32>
    %90 = math.rsqrt %89 : vector<8x1xf32>
    %91 = vector.broadcast %90 : vector<8x1xf32> to vector<8x32xf32>
    %92 = arith.mulf %82, %91 : vector<8x32xf32>
    %93 = vector.broadcast %4 : vector<1x32xf32> to vector<8x32xf32>
    %94 = arith.mulf %92, %93 : vector<8x32xf32>
    %95 = vector.broadcast %5 : vector<1x32xf32> to vector<8x32xf32>
    %96 = arith.addf %94, %95 : vector<8x32xf32>
    %c0_47 = arith.constant 0 : index
    %c0_48 = arith.constant 0 : index
    %c0_49 = arith.constant 0 : index
    %97 = vector.load %arg10[%c0_47, %c0_48, %c0_49] : memref<1x8x32xf32, #tpu.memory_space<vmem>>, vector<1x8x32xf32>
    %98 = vector.shape_cast %97 : vector<1x8x32xf32> to vector<8x32xf32>
    %99 = vector.shape_cast %96 : vector<8x32xf32> to vector<1x8x32xf32>
    tpu.vector_store %arg10[%c0_47, %c0_48, %c0_49], %99 {strides = array<i32>} : memref<1x8x32xf32, #tpu.memory_space<vmem>>, vector<1x8x32xf32>,
    return
  }
  func.func @transform_0(%arg0: i32, %arg1: i32) -> (i32, i32, i32) {
    %c0_i32 = arith.constant 0 : i32
    %c0_i32_0 = arith.constant 0 : i32
    %c0_i32_1 = arith.constant 0 : i32
    return %arg0, %c0_i32, %c0_i32_0 : i32, i32, i32
  }
  func.func @transform_1(%arg0: i32, %arg1: i32) -> (i32, i32) {
    %c0_i32 = arith.constant 0 : i32
    %c0_i32_0 = arith.constant 0 : i32
    %c0_i32_1 = arith.constant 0 : i32
    return %c0_i32, %c0_i32_0 : i32, i32
  }
  func.func @transform_2(%arg0: i32, %arg1: i32) -> (i32, i32) {
    %c0_i32 = arith.constant 0 : i32
    %c0_i32_0 = arith.constant 0 : i32
    %c0_i32_1 = arith.constant 0 : i32
    return %c0_i32, %c0_i32_0 : i32, i32
  }
  func.func @transform_3(%arg0: i32, %arg1: i32) -> (i32, i32) {
    %c0_i32 = arith.constant 0 : i32
    %c0_i32_0 = arith.constant 0 : i32
    %c0_i32_1 = arith.constant 0 : i32
    return %c0_i32, %c0_i32_0 : i32, i32
  }
  func.func @transform_4(%arg0: i32, %arg1: i32) -> (i32, i32) {
    %c0_i32 = arith.constant 0 : i32
    %c0_i32_0 = arith.constant 0 : i32
    %c0_i32_1 = arith.constant 0 : i32
    return %c0_i32, %c0_i32_0 : i32, i32
  }
  func.func @transform_5(%arg0: i32, %arg1: i32) -> (i32, i32) {
    %c0_i32 = arith.constant 0 : i32
    %c0_i32_0 = arith.constant 0 : i32
    %c0_i32_1 = arith.constant 0 : i32
    return %c0_i32, %c0_i32_0 : i32, i32
  }
  func.func @transform_6(%arg0: i32, %arg1: i32) -> (i32, i32) {
    %c0_i32 = arith.constant 0 : i32
    %c0_i32_0 = arith.constant 0 : i32
    %c0_i32_1 = arith.constant 0 : i32
    return %c0_i32, %c0_i32_0 : i32, i32
  }
  func.func @transform_7(%arg0: i32, %arg1: i32) -> (i32, i32) {
    %c0_i32 = arith.constant 0 : i32
    %c0_i32_0 = arith.constant 0 : i32
    %c0_i32_1 = arith.constant 0 : i32
    return %c0_i32, %c0_i32_0 : i32, i32
  }
  func.func @transform_8(%arg0: i32, %arg1: i32) -> (i32, i32, i32) {
    %c0_i32 = arith.constant 0 : i32
    %c0_i32_0 = arith.constant 0 : i32
    return %arg0, %arg1, %c0_i32 : i32, i32, i32
  }
}

</mosaic_0001>

<bundles_post_ra>
// kernel: tpu_custom_call.1
= control target key start
LH: loop header
LB: loop body
LE: loop exit
PB: predicated region body
PF: predicated region fallthrough
CT: control target
= control target key end

     0   :  { %s2564_s0 = inlined_call_operand.vmem [shape: f32[2,8,32], index: 0, kind: input, shape index: {}]   ;;  %s2565_s1 = inlined_call_operand.vmem [shape: f32[32,32], index: 1, kind: input, shape index: {}]   ;;  %s2566_s2 = inlined_call_operand.vmem [shape: f32[64,32], index: 2, kind: input, shape index: {}]   ;;  %s2567_s3 = inlined_call_operand.vmem [shape: f32[32,32], index: 3, kind: input, shape index: {}]   ;;  %s2568_s4 = inlined_call_operand.vmem [shape: f32[32,64], index: 4, kind: input, shape index: {}]   ;;  %s2569_s5 = inlined_call_operand.vmem [shape: f32[64,32], index: 5, kind: input, shape index: {}]   ;;  %s2570_s6 = inlined_call_operand.vmem [shape: f32[1,64], index: 6, kind: input, shape index: {}]   ;;  %s2571_s7 = inlined_call_operand.vmem [shape: f32[8,32], index: 7, kind: input, shape index: {}]   ;;  %s2572_s8 = inlined_call_operand.hbm [shape: f32[2,8,32], index: 8, kind: output, shape index: {}]  }
   0x1   :  { %2573 = sst [smem:[#allocation6_spill]] %s2564_s0 }
   0x2   :  { %13 = vsyncpa [#allocation4], 0 }
   0x3   :  { %15 = vsyncpa [#allocation4 + $0x1], 0  ;;  %s2247_s27 = smov 0   ;;  %s2249_s28 = smov 0  }
   0x4   :  { %s2251_s29 = smov 0   ;;  %s2253_s30 = smov 0  }
   0x5   :  { %s2255_s9 = smov 0   ;;  %s2257_s10 = smov 0  }
   0x6 LB: > { %s1841_s11 = sadd.s32 4294967295, %s2197_s10   ;;  %s1842_s12 = sadd.s32 4294967294, %s2197_s10   ;;  %s2197_s10 = sphi %s2257_s10, %s21_s10   ;;  %s2193_s9 = sphi %s2255_s9, %s2581_s9   ;;  %s2189_s30 = sphi %s2253_s30, %s2580_s30   ;;  %s2185_s29 = sphi %s2251_s29, %s2579_s29   ;;  %s2181_s28 = sphi %s2249_s28, %s2578_s28   ;;  %s2177_s27 = sphi %s2247_s27, %s2577_s27  }
   0x7   : > { %s33_s13 = sadd.s32 1, %s2193_s9  ;;  %s215_s14 = sadd.s32 1, %s2185_s29 }
   0x8   : > { %p35_p0 = scmp.ge.s32.totalorder %s33_s13, 2  ;;  %p225_p1 = scmp.ne.s32.totalorder %s2185_s29, %s2181_s28 }
   0x9   : > { %p226_p2 = scmp.eq.s32.totalorder %s1841_s11, 1  ;;  %p231_p3 = scmp.ne.s32.totalorder %s2181_s28, %s2177_s27 }
   0xa   : > { %s2583_s13 = smov (%p35_p0, %s33_s13), 0  ;;  %p232_p5 = scmp.eq.s32.totalorder %s1842_s12, 1 }
   0xb   : > { %p2287_p4 = por %p226_p2, %p225_p1  ;;  %s210_s16 = ssub.s32 %s2193_s9, %s2583_s13 }
   0xc   : > { %p1845_p6 = scmp.ge.s32.totalorder %s2197_s10, 1  ;;  %p213_p7 = scmp.eq.s32.totalorder %s210_s16, 0 }
   0xd   : > { %p2294_p8 = por %p232_p5, %p231_p3  ;;  %p278_p9 = scmp.lt.s32.totalorder %s2197_s10, 3 }
   0xe   : > { %s2300_s18 = scalar_select %p213_p7, %s2185_s29, %s215_s14  }
   0xf   : > { %p279_p10 = pnand %p1845_p6, %p278_p9 }
  0x10   : > { %p311_p11 = scmp.lt.s32.totalorder (!%p279_p10), %s2189_s30, 1  ;;  %s2576_s0 = sld [smem:[#allocation6_spill]] (!%p279_p10) }
  0x11   : > { %282 = sbr.rel (%p279_p10) target bundleno = 2270 (0x8de), region = 52  ;;  %s308_s16 = sand.u32 (!%p279_p10), 1, %s2181_s28  }
  0x12   : > { %s1846_s19 = sshll.u32 (!%p279_p10), %s308_s16, 3 }
  0x13   : > { %s310_s25 = scalar_lea.vmem (!%p279_p10), [#allocation3], %s1846_s19 }
  0x14   : > { %s1771_s26 = sshll.u32 (!%p279_p10), %s310_s25, 4  ;;  %s1772_s26 = int_to_ptr.vmem [resolvable:$true] %s1771_s26 }
  0x15   : > { %s2121_s20 = scalar_lea.vmem (!%p279_p10), %s1772_s26, 128 }
  0x16   : > { %vm334_vm0 = vcmask 261120   ;;  %v330_v0 = vld [vmem:[%s2566_s2 + $0x20] sm:$0xff]  ;;  %s312_s21 = scalar_select %p311_p11, %s2189_s30, 1  ;;  %v331_v3 = vld [vmem:[%s2566_s2 + $0x28] sm:$0xff]  ;;  %v332_v5 = vld [vmem:[%s2566_s2 + $0x30] sm:$0xff]  ;;  %v2199_v13 = vmov 0.0  }
  0x17   : > { %1945 = vmatprep.mubr.msk.f32.mxu1 %vm334_vm0, %v330_v0  ;;  %v326_v1 = vld [vmem:[%s2566_s2] sm:$0xff]  ;;  %v327_v4 = vld [vmem:[%s2566_s2 + $0x8] sm:$0xff]  ;;  %v328_v6 = vld [vmem:[%s2566_s2 + $0x10] sm:$0xff]  ;;  %vm2200_vm1 = vmmov 0   ;;  %vm467_vm2 = vcmask 64512   ;;  %vm1657_vm3 = vcmask 523264   ;;  %p2122_p12 = scmp.ne.s32.totalorder %s1772_s26, %s2121_s20 }
  0x18   : > { %1939 = vmatprep.mubr.msk.f32.mxu0 %vm334_vm0, %v326_v1  ;;  %s1847_s24 = sshll.u32 %s312_s21, 3  ;;  %v333_v7 = vld [vmem:[%s2566_s2 + $0x38] sm:$0xff]  ;;  %v479_v9 = vld [vmem:[%s2565_s1] sm:$0xff]  ;;  %v480_v10 = vld [vmem:[%s2565_s1 + $0x8] sm:$0xff]  ;;  %s2201_s21 = smov [#allocation3]  }
  0x19   : > { %s314_s11 = scalar_lea.vmem %s2576_s0, %s1847_s24  ;;  %v329_v8 = vld [vmem:[%s2566_s2 + $0x18] sm:$0xff]  ;;  %v481_v11 = vld [vmem:[%s2565_s1 + $0x10] sm:$0xff]  ;;  %s1885_s24 = sshll.u32 %s2189_s30, 7 }
  0x1a   : > { %v2315_v2 = vld [vmem:[%s314_s11] sm:$0xff]  ;;  %v482_v12 = vld [vmem:[%s2565_s1 + $0x18] sm:$0xff]  ;;  %s1769_s14 = scalar_lea.hbm %s2572_s8, %s1885_s24  ;;  %s1757_s0 = scalar_lea.sflag [#allocation4], %s308_s16 }
  0x1b   : > { %2040 = vmatprep.subr.msk.mxu1 %vm334_vm0, %v2315_v2  ;;  %1937 = vmatprep.subr.msk.mxu0 %vm334_vm0, %v2315_v2  ;;  %p2123_p13 = pnand %p2122_p12, %p2287_p4  ;;  %s2125_s22 = sshll.u32 %s2201_s21, 4  ;;  %s2126_s22 = int_to_ptr.vmem [resolvable:$false] %s2125_s22 }
  0x1c   : > { %2041 = vmatpush3.xpose.msk.msra.mxu1 %vm334_vm0, %v2315_v2  ;;  %1938 = vmatpush3.xpose.msk.msra.mxu0 %vm334_vm0, %v2315_v2  ;;  %s2127_s30 = scalar_lea.vmem %s2126_s22, 256  ;;  %p2128_p1 = scmp.lt.s32.totalorder %s1772_s26, %s2126_s22 }
  0x1d   : > { %1951 = vmatprep.subr.msk.mxu1 %vm334_vm0, %v2315_v2  ;;  %1969 = vmatprep.subr.mxu0 %v2199_v13  ;;  %p2124_p0 = pneg %p2123_p13  ;;  %p2129_p2 = scmp.lt.s32.totalorder %s2127_s30, %s2121_s20 }
  0x1f   : > { %1946 = vmatmul.mubr.msk.f32.vlgmr.msra.gmra.mxu1 %vm334_vm0, %v331_v3  ;;  %1940 = vmatmul.mubr.msk.f32.vlgmr.msra.gmra.mxu0 %vm334_vm0, %v327_v4  ;;  %p2130_p3 = por %p2129_p2, %p2128_p1 }
  0x20   : > { %1952 = vmatpush3.xpose.msk.msra.mxu1 %vm334_vm0, %v2315_v2  ;;  %1948 = vmatprep.mubr.msk.f32.mxu1 %vm334_vm0, %v332_v5 }
  0x21   : > { %1942 = vmatprep.mubr.msk.f32.mxu0 %vm334_vm0, %v328_v6  ;;  %1959 = vmatprep.subr.mxu1 %v2199_v13  ;;  %p2131_p5 = pnand %p2130_p3, %p2124_p0 }
  0x23   : > { %1949 = vmatmul.mubr.msk.f32.gmra.mxu1 %vm334_vm0, %v333_v7  ;;  %1943 = vmatmul.mubr.msk.f32.gmra.mxu0 %vm334_vm0, %v329_v8  ;;  %v1421_v7 = vld [vmem:[%s2567_s3 + $0x18] sm:$0xff]  ;;  %v1420_v8 = vld [vmem:[%s2567_s3 + $0x10] sm:$0xff] }
  0x24   : > { %1953 = vmatprep.mubr.msk.f32.mxu1 %vm334_vm0, %v479_v9  ;;  %1971 = vmatprep.mubr.msk.f32.mxu0 %vm2200_vm1, %v2199_v13  ;;  %v1419_v9 = vld [vmem:[%s2567_s3 + $0x8] sm:$0xff] }
  0x27   : > { %1954 = vmatmul.mubr.msk.f32.vlgmr.msra.gmra.mxu1 %vm334_vm0, %v480_v10  ;;  %v1418_v10 = vld [vmem:[%s2567_s3] sm:$0xff] }
  0x28   : > { %1956 = vmatprep.mubr.msk.f32.mxu1 %vm334_vm0, %v481_v11 }
  0x2b   : > { %1957 = vmatmul.mubr.msk.f32.gmra.mxu1 %vm334_vm0, %v482_v12 }
  0x2c   : > { %1961 = vmatprep.mubr.msk.f32.mxu1 %vm2200_vm1, %v2199_v13 }
  0xdf   : > { %v1947_v14 = vpop.f32.mrf.mxu1  ;;  %v1941_v15 = vpop.f32.mrf.mxu0 }
  0xe0   : > { %473 = vst.msk [vmem:[#allocation2 + $0x28] sm:$0xff] %vm467_vm2, %v1947_v14  ;;  %469 = vst.msk [vmem:[#allocation2 + $0x8] sm:$0xff] %vm467_vm2, %v1941_v15  ;;  %v1362_v14 = vlaneseq }
  0xe1   : > { %v448_v16 = vpop.f32.mrf.mxu1  ;;  %v428_v17 = vpop.f32.mrf.mxu0 }
  0xe2   : > { %472 = vst.msk [vmem:[#allocation2 + $0x20] sm:$0xff] %vm467_vm2, %v448_v16  ;;  %468 = vst.msk [vmem:[#allocation2] sm:$0xff] %vm467_vm2, %v428_v17  ;;  %v1363_v16 = vand.u32 127, %v1362_v14  ;;  %v1365_v17 = vshrl.u32 %v1362_v14, 7 }
  0xe3   : > { %v1950_v18 = vpop.f32.mrf.mxu1  ;;  %v1944_v19 = vpop.f32.mrf.mxu0 }
  0xe4   : > { %475 = vst.msk [vmem:[#allocation2 + $0x38] sm:$0xff] %vm467_vm2, %v1950_v18  ;;  %471 = vst.msk [vmem:[#allocation2 + $0x18] sm:$0xff] %vm467_vm2, %v1944_v19  ;;  %v1366_v19 = vsub.s32 %v1363_v16, %v1365_v17 }
  0xe5   : > { %v458_v20 = vpop.f32.mrf.mxu1  ;;  %v438_v21 = vpop.f32.mrf.mxu0 }
  0xe6   : > { %474 = vst.msk [vmem:[#allocation2 + $0x30] sm:$0xff] %vm467_vm2, %v458_v20  ;;  %470 = vst.msk [vmem:[#allocation2 + $0x10] sm:$0xff] %vm467_vm2, %v438_v21 }
  0xe7   : > { %v1955_v22 = vpop.f32.mrf.mxu1  ;;  %v585_v29 = vld [vmem:[#allocation2 + $0x8] sm:$0xff] }
  0xe8   : > { %v590_v63 = vld [vmem:[#allocation2 + $0x28] sm:$0xff] }
  0xe9   : > { %v565_v23 = vpop.f32.mrf.mxu1  ;;  %v584_v24 = vld [vmem:[#allocation2] sm:$0xff] }
  0xea   : > { %593 = vxpose.xlu0.b32.start.end [1/1] (short) (narrow) %v565_v23, 8  ;;  %1960 = vmatpush3.msra.mxu1 %v584_v24  ;;  %v589_v60 = vld [vmem:[#allocation2 + $0x20] sm:$0xff] }
  0xeb   : > { %v1958_v25 = vpop.f32.mrf.mxu1  ;;  %1964 = vmatprep.subr.mxu1 %v2199_v13  ;;  %v587_v30 = vld [vmem:[#allocation2 + $0x18] sm:$0xff] }
  0xec   : > { %v592_v6 = vld [vmem:[#allocation2 + $0x38] sm:$0xff] }
  0xed   : > { %v575_v26 = vpop.f32.mrf.mxu1  ;;  %v586_v27 = vld [vmem:[#allocation2 + $0x10] sm:$0xff] }
  0xee   : > { %699 = vxpose.xlu0.b32.start.end [1/1] (short) (narrow) %v1955_v22, 8  ;;  %804 = vxpose.xlu1.b32.start.end [1/1] (short) (narrow) %v575_v26, 8  ;;  %v591_v3 = vld [vmem:[#allocation2 + $0x30] sm:$0xff] }
  0xef   : > { %1970 = vmatpush3.msra.mxu0 %v586_v27 }
  0xf0   : > { %1979 = vmatprep.subr.mxu0 %v2199_v13 }
  0xf2   : > { %909 = vxpose.xlu1.b32.start.end [1/1] (short) (narrow) %v1958_v25, 8 }
 0x166   : > { %v609_v28 = vpop.trf.xlu0 }
 0x167   : > { %1962 = vmatmul.mubr.msk.f32.vlgmr.msra.gmra.mxu1 %vm467_vm2, %v609_v28 }
 0x168   : > { %1965 = vmatpush3.msra.mxu1 %v585_v29  ;;  %1966 = vmatprep.mubr.msk.f32.mxu1 %vm2200_vm1, %v2199_v13 }
 0x169   : > { %1974 = vmatprep.subr.mxu1 %v2199_v13 }
 0x16a   : > { %v715_v31 = vpop.trf.xlu0  ;;  %v820_v32 = vpop.trf.xlu1 }
 0x16b   : > { %1967 = vmatmul.mubr.msk.f32.vlgmr.msra.gmra.mxu1 %vm467_vm2, %v715_v31  ;;  %1972 = vmatmul.mubr.msk.f32.vlgmr.msra.gmra.mxu0 %vm467_vm2, %v820_v32 }
 0x16c   : > { %1975 = vmatpush3.msra.mxu1 %v587_v30  ;;  %1976 = vmatprep.mubr.msk.f32.mxu1 %vm2200_vm1, %v2199_v13 }
 0x16d   : > { %1981 = vmatprep.mubr.msk.f32.mxu0 %vm2200_vm1, %v2199_v13  ;;  %1984 = vmatprep.subr.mxu1 %v2199_v13 }
 0x16e   : > { %v925_v33 = vpop.trf.xlu1 }
 0x16f   : > { %1977 = vmatmul.mubr.msk.f32.vlgmr.msra.gmra.mxu1 %vm467_vm2, %v925_v33 }
 0x170   : > { %1986 = vmatprep.mubr.msk.f32.mxu1 %vm2200_vm1, %v2199_v13 }
 0x227   : > { %v695_v34 = vpop.f32.mrf.mxu1 }
 0x228   : > { %v1014_v35 = vsel %vm467_vm2, %v695_v34, -inf }
 0x229   : > { %1015 = vmax.xlane.f32.xlu0 %v1014_v35  ;;  %v1963_v36 = vpop.f32.mrf.mxu1 }
 0x22b   : > { %v800_v37 = vpop.f32.mrf.mxu1  ;;  %v905_v38 = vpop.f32.mrf.mxu0 }
 0x22c   : > { %v1017_v39 = vsel %vm467_vm2, %v800_v37, -inf  ;;  %v1020_v42 = vsel %vm467_vm2, %v905_v38, -inf }
 0x22d   : > { %1018 = vmax.xlane.f32.xlu1 %v1017_v39  ;;  %v1968_v40 = vpop.f32.mrf.mxu1  ;;  %v1973_v41 = vpop.f32.mrf.mxu0 }
 0x22e   : > { %v1874_v41 = vld [vmem:[%s2571_s7] ss:$0 sm:$0xff] }
 0x22f   : > { %v1010_v43 = vpop.f32.mrf.mxu1 }
 0x230   : > { %v1023_v45 = vsel %vm467_vm2, %v1010_v43, -inf }
 0x231   : > { %1021 = vmax.xlane.f32.xlu1 %v1020_v42  ;;  %v1978_v44 = vpop.f32.mrf.mxu1 }
 0x235   : > { %1024 = vmax.xlane.f32.xlu1 %v1023_v45 }
 0x2b2   : > { %v1016_v46 = vpop.xlane.xlu0 %1015 }
 0x2b3   : > { %v1026_v47 = vsub.f32 %v695_v34, %v1016_v46 }
 0x2b5   : > { %v1030_v48 = vmul.f32 1.442695, %v1026_v47 }
 0x2b6   : > { %v1019_v49 = vpop.xlane.xlu1 %1018 }
 0x2b7   : > { %2099 = vpow2.f32 %v1030_v48  ;;  %v1027_v50 = vsub.f32 %v800_v37, %v1019_v49 }
 0x2b9   : > { %v1032_v51 = vmul.f32 1.442695, %v1027_v50 }
 0x2ba   : > { %v1022_v52 = vpop.xlane.xlu1 %1021 }
 0x2bb   : > { %2101 = vpow2.f32 %v1032_v51  ;;  %v1028_v53 = vsub.f32 %v905_v38, %v1022_v52  ;;  %v1559_v52 = vld [vmem:[%s2568_s4 + $0x18] sm:$0xff] }
 0x2bd   : > { %v1034_v54 = vmul.f32 1.442695, %v1028_v53  ;;  %v1557_v53 = vld [vmem:[%s2568_s4 + $0x8] sm:$0xff] }
 0x2be   : > { %v1025_v55 = vpop.xlane.xlu1 %1024 }
 0x2bf   : > { %2103 = vpow2.f32 %v1034_v54  ;;  %v1029_v56 = vsub.f32 %v1010_v43, %v1025_v55  ;;  %v1556_v54 = vld [vmem:[%s2568_s4] sm:$0xff] }
 0x2c1   : > { %v1036_v57 = vmul.f32 1.442695, %v1029_v56 }
 0x2c3   : > { %2105 = vpow2.f32 %v1036_v57 }
 0x2c4   : > { %v2100_v58 = vpop.eup %2099 }
 0x2c5   : > { %1980 = vmatpush3.xpose.msk.msra.mxu0 %vm467_vm2, %v2100_v58  ;;  %v1038_v59 = vsel %vm467_vm2, %v2100_v58, 0.0 }
 0x2c6   : > { %1039 = vadd.xlane.f32.xlu0 %v1038_v59  ;;  %1989 = vmatprep.subr.mxu0 %v2199_v13  ;;  %v1876_v59 = vld [vmem:[%s2571_s7 + $0x1] ss:$0 sm:$0xff] }
 0x2c8   : > { %v2102_v61 = vpop.eup %2101  ;;  %1982 = vmatmul.mubr.msk.f32.vlgmr.msra.gmra.mxu0 %vm467_vm2, %v589_v60 }
 0x2c9   : > { %1985 = vmatpush3.xpose.msk.msra.mxu1 %vm467_vm2, %v2102_v61  ;;  %v1041_v62 = vsel %vm467_vm2, %v2102_v61, 0.0  ;;  %1991 = vmatprep.mubr.msk.f32.mxu0 %vm2200_vm1, %v2199_v13  ;;  %v1877_v61 = vld [vmem:[%s2571_s7 + $0x2] ss:$0 sm:$0xff] }
 0x2ca   : > { %1042 = vadd.xlane.f32.xlu1 %v1041_v62  ;;  %1994 = vmatprep.subr.mxu1 %v2199_v13 }
 0x2cc   : > { %v2104_v0 = vpop.eup %2103  ;;  %1987 = vmatmul.mubr.msk.f32.vlgmr.msra.gmra.mxu1 %vm467_vm2, %v590_v63 }
 0x2cd   : > { %1990 = vmatpush3.xpose.msk.msra.mxu0 %vm467_vm2, %v2104_v0  ;;  %v1044_v1 = vsel %vm467_vm2, %v2104_v0, 0.0  ;;  %1996 = vmatprep.mubr.msk.f32.mxu1 %vm2200_vm1, %v2199_v13  ;;  %v1652_v0 = vld [vmem:[%s2569_s5 + $0x38] sm:$0xff] }
 0x2ce   : > { %1045 = vadd.xlane.f32.xlu0 %v1044_v1  ;;  %1999 = vmatprep.subr.mxu0 %v2199_v13  ;;  %v1651_v1 = vld [vmem:[%s2569_s5 + $0x30] sm:$0xff] }
 0x2d0   : > { %v2106_v4 = vpop.eup %2105  ;;  %1992 = vmatmul.mubr.msk.f32.vlgmr.msra.gmra.mxu0 %vm467_vm2, %v591_v3  ;;  %v1650_v3 = vld [vmem:[%s2569_s5 + $0x28] sm:$0xff] }
 0x2d1   : > { %1995 = vmatpush3.xpose.msk.msra.mxu1 %vm467_vm2, %v2106_v4  ;;  %v1047_v5 = vsel %vm467_vm2, %v2106_v4, 0.0  ;;  %2007 = vmatprep.mubr.msk.f32.mxu0 %vm2200_vm1, %v2199_v13  ;;  %v1649_v4 = vld [vmem:[%s2569_s5 + $0x20] sm:$0xff] }
 0x2d2   : > { %1048 = vadd.xlane.f32.xlu1 %v1047_v5  ;;  %2010 = vmatprep.subr.mxu1 %v2199_v13  ;;  %v1648_v5 = vld [vmem:[%s2569_s5 + $0x18] sm:$0xff] }
 0x2d3   : > { %2000 = vmatpush3.msra.mxu0 %v1421_v7  ;;  %v1646_v7 = vld [vmem:[%s2569_s5 + $0x8] sm:$0xff] }
 0x2d4   : > { %1997 = vmatmul.mubr.msk.f32.vlgmr.msra.gmra.mxu1 %vm467_vm2, %v592_v6  ;;  %2001 = vmatprep.subr.mxu0 %v2199_v13  ;;  %v1647_v6 = vld [vmem:[%s2569_s5 + $0x10] sm:$0xff] }
 0x2d5   : > { %2018 = vmatprep.mubr.msk.f32.mxu1 %vm2200_vm1, %v2199_v13  ;;  %2002 = vmatpush3.msra.mxu0 %v1420_v8  ;;  %v1645_v8 = vld [vmem:[%s2569_s5] sm:$0xff] }
 0x2d6   : > { %2003 = vmatprep.subr.mxu0 %v2199_v13  ;;  %2011 = vmatpush3.msra.mxu1 %v1559_v52 }
 0x2d7   : > { %2004 = vmatpush3.msra.mxu0 %v1419_v9  ;;  %2012 = vmatprep.subr.mxu1 %v2199_v13  ;;  %v1878_v9 = vld [vmem:[%s2570_s6] ss:$0 sm:$0xff] }
 0x2d8   : > { %2005 = vmatprep.subr.mxu0 %v2199_v13 }
 0x2d9   : > { %2006 = vmatpush3.msra.mxu0 %v1418_v10 }
 0x2da   : > { %2021 = vmatprep.subr.mxu0 %v2199_v13 }
 0x34f   : > { %v1040_v11 = vpop.xlane.xlu0 %1039 }
 0x350   : > { %2107 = vrcp.f32 %v1040_v11 }
 0x353   : > { %v1043_v12 = vpop.xlane.xlu1 %1042 }
 0x354   : > { %2109 = vrcp.f32 %v1043_v12 }
 0x357   : > { %v1046_v15 = vpop.xlane.xlu0 %1045 }
 0x358   : > { %2111 = vrcp.f32 %v1046_v15 }
 0x35b   : > { %v1049_v18 = vpop.xlane.xlu1 %1048 }
 0x35c   : > { %2113 = vrcp.f32 %v1049_v18 }
 0x35d   : > { %v2108_v20 = vpop.eup %2107 }
 0x35e   : > { %v1367_v21 = vrot.slane %v2108_v20, %v1366_v19 }
 0x361   : > { %v2110_v22 = vpop.eup %2109 }
 0x362   : > { %v1371_v26 = vrot.slane %v2110_v22, %v1366_v19 }
 0x365   : > { %v2112_v27 = vpop.eup %2111 }
 0x366   : > { %v1375_v31 = vrot.slane %v2112_v27, %v1366_v19 }
 0x369   : > { %v2114_v32 = vpop.eup %2113 }
 0x36a   : > { %v1379_v36 = vrot.slane %v2114_v32, %v1366_v19 }
 0x388   : > { %v1122_v23 = vpop.f32.mrf.mxu0 }
 0x389   : > { %v1414_v24 = vmul.f32 %v1367_v21, %v1122_v23 }
 0x38a   : > { %v1983_v25 = vpop.f32.mrf.mxu0 }
 0x38b   : > { %1426 = vxpose.xlu0.b32.start [1/4] (short) (narrow) %v1414_v24, 8 }
 0x38c   : > { %v1198_v28 = vpop.f32.mrf.mxu1 }
 0x38d   : > { %v1415_v29 = vmul.f32 %v1371_v26, %v1198_v28 }
 0x38e   : > { %v1988_v30 = vpop.f32.mrf.mxu1 }
 0x38f   : > { %1427 = vxpose.xlu0.b32.cont [2/4] (short) (narrow) %v1415_v29, 8 }
 0x390   : > { %v1274_v33 = vpop.f32.mrf.mxu0 }
 0x391   : > { %v1416_v34 = vmul.f32 %v1375_v31, %v1274_v33  ;;  %v1882_v33 = vld [vmem:[%s2571_s7 + $0x4] ss:$0 sm:$0xff] }
 0x392   : > { %v1993_v35 = vpop.f32.mrf.mxu0 }
 0x393   : > { %1428 = vxpose.xlu0.b32.cont [3/4] (short) (narrow) %v1416_v34, 8  ;;  %v1883_v35 = vld [vmem:[%s2571_s7 + $0x5] ss:$0 sm:$0xff] }
 0x394   : > { %v1350_v37 = vpop.f32.mrf.mxu1 }
 0x395   : > { %v1417_v38 = vmul.f32 %v1379_v36, %v1350_v37 }
 0x396   : > { %v1998_v39 = vpop.f32.mrf.mxu1 }
 0x397   : > { %1429 = vxpose.xlu0.b32.end [4/4] (short) (narrow) %v1417_v38, 8 }
 0x407   : > { %v1442_v40 = vpop.trf.xlu0 }
 0x408   : > { %2008 = vmatmul.mubr.msk.f32.vlgmr.msra.gmra.mxu0 %vm334_vm0, %v1442_v40 }
 0x409   : > { %2037 = vmatprep.mubr.msk.f32.mxu0 %vm2200_vm1, %v2199_v13  ;;  %2022 = vmatpush3.msra.mxu0 %v1652_v0 }
 0x40a   : > { %2023 = vmatprep.subr.mxu0 %v2199_v13 }
 0x40b   : > { %2024 = vmatpush3.msra.mxu0 %v1651_v1 }
 0x40c   : > { %2025 = vmatprep.subr.mxu0 %v2199_v13 }
 0x40d   : > { %2026 = vmatpush3.msra.mxu0 %v1650_v3 }
 0x40e   : > { %2027 = vmatprep.subr.mxu0 %v2199_v13 }
 0x40f   : > { %2028 = vmatpush3.msra.mxu0 %v1649_v4 }
 0x410   : > { %2029 = vmatprep.subr.mxu0 %v2199_v13 }
 0x411   : > { %2030 = vmatpush3.msra.mxu0 %v1648_v5 }
 0x412   : > { %2031 = vmatprep.subr.mxu0 %v2199_v13 }
 0x413   : > { %2032 = vmatpush3.msra.mxu0 %v1647_v6 }
 0x414   : > { %2033 = vmatprep.subr.mxu0 %v2199_v13 }
 0x415   : > { %2034 = vmatpush3.msra.mxu0 %v1646_v7 }
 0x416   : > { %2035 = vmatprep.subr.mxu0 %v2199_v13 }
 0x417   : > { %2036 = vmatpush3.msra.mxu0 %v1645_v8 }
 0x4c8   : > { %v1527_v42 = vpop.f32.mrf.mxu0 }
 0x4c9   : > { %v1528_v43 = vadd.f32 %v1874_v41, %v1527_v42 }
 0x4ca   : > { %v2009_v44 = vpop.f32.mrf.mxu0 }
 0x4cb   : > { %v2450_v45 = vadd.f32 %v1528_v43, %v2315_v2  ;;  %v1558_v2 = vld [vmem:[%s2568_s4 + $0x10] sm:$0xff] }
 0x4cc   : > { %2013 = vmatpush3.msra.mxu1 %v1558_v2 }
 0x4cd   : > { %v1532_v46 = vsel %vm334_vm0, %v2450_v45, 0.0  ;;  %2014 = vmatprep.subr.mxu1 %v2199_v13 }
 0x4ce   : > { %1533 = vadd.xlane.f32.xlu1 %v1532_v46  ;;  %2015 = vmatpush3.msra.mxu1 %v1557_v53 }
 0x4cf   : > { %2016 = vmatprep.subr.mxu1 %v2199_v13  ;;  %v1880_v13 = vld [vmem:[%s2571_s7 + $0x3] ss:$0 sm:$0xff] }
 0x4d0   : > { %2017 = vmatpush3.msra.mxu1 %v1556_v54 }
 0x557   : > { %v1534_v47 = vpop.xlane.xlu1 %1533 }
 0x558   : > { %v1536_v48 = vmul.f32 0.03125, %v1534_v47 }
 0x55a   : > { %v1537_v49 = vsub.f32 %v2450_v45, %v1536_v48 }
 0x55c   : > { %v1538_v50 = vmul.f32 %v1537_v49, %v1537_v49 }
 0x55e   : > { %v1539_v51 = vsel %vm334_vm0, %v1538_v50, 0.0 }
 0x55f   : > { %1540 = vadd.xlane.f32.xlu1 %v1539_v51 }
 0x5e8   : > { %v1541_v55 = vpop.xlane.xlu1 %1540 }
 0x5e9   : > { %v1542_v56 = vmul.f32 0.03125, %v1541_v55 }
 0x5eb   : > { %v1543_v57 = vadd.f32 1e-05, %v1542_v56 }
 0x5ed   : > { %2115 = vrsqrt.f32 %v1543_v57 }
 0x5fa   : > { %v2116_v58 = vpop.eup %2115 }
 0x5fb   : > { %v1545_v60 = vmul.f32 %v2116_v58, %v1537_v49 }
 0x5fd   : > { %v1550_v62 = vmul.f32 %v1876_v59, %v1545_v60 }
 0x5ff   : > { %v1555_v63 = vadd.f32 %v1877_v61, %v1550_v62 }
 0x601   : > { %2019 = vmatmul.mubr.msk.f32.vlgmr.msra.gmra.mxu1 %vm334_vm0, %v1555_v63 }
 0x6c1   : > { %v1636_v10 = vpop.f32.mrf.mxu1 }
 0x6c2   : > { %v1637_v11 = vadd.f32 %v1878_v9, %v1636_v10 }
 0x6c3   : > { %v2020_v12 = vpop.f32.mrf.mxu1 }
 0x6c4   : > { %v1641_v14 = vmul.f32 0.70710677, %v1637_v11  ;;  %v1640_v16 = vmul.f32 0.5, %v1637_v11 }
 0x6c6   : > { %2117 = verf.f32 %v1641_v14 }
 0x6d3   : > { %v2118_v15 = vpop.eup %2117 }
 0x6d4   : > { %v1643_v17 = vadd.f32 1.0, %v2118_v15 }
 0x6d6   : > { %v1644_v18 = vmul.f32 %v1643_v17, %v1640_v16 }
 0x6d8   : > { %2038 = vmatmul.mubr.msk.f32.vlgmr.msra.gmra.mxu0 %vm1657_vm3, %v1644_v18 }
 0x798   : > { %v1727_v19 = vpop.f32.mrf.mxu0 }
 0x799   : > { %v1728_v20 = vadd.f32 %v1880_v13, %v1727_v19 }
 0x79a   : > { %v2039_v21 = vpop.f32.mrf.mxu0 }
 0x79b   : > { %v1731_v22 = vadd.f32 %v1728_v20, %v2450_v45 }
 0x79d   : > { %v1732_v23 = vsel %vm334_vm0, %v1731_v22, 0.0 }
 0x79e   : > { %1733 = vadd.xlane.f32.xlu1 %v1732_v23 }
 0x827   : > { %v1734_v24 = vpop.xlane.xlu1 %1733 }
 0x828   : > { %v1735_v25 = vmul.f32 0.03125, %v1734_v24 }
 0x82a   : > { %v1736_v26 = vsub.f32 %v1731_v22, %v1735_v25 }
 0x82c   : > { %v1737_v27 = vmul.f32 %v1736_v26, %v1736_v26 }
 0x82e   : > { %v1738_v28 = vsel %vm334_vm0, %v1737_v27, 0.0 }
 0x82f   : > { %1739 = vadd.xlane.f32.xlu1 %v1738_v28 }
 0x8b8   : > { %v1740_v29 = vpop.xlane.xlu1 %1739 }
 0x8b9   : > { %v1741_v30 = vmul.f32 0.03125, %v1740_v29 }
 0x8bb   : > { %v1742_v31 = vadd.f32 1e-05, %v1741_v30 }
 0x8bd   : > { %2119 = vrsqrt.f32 %v1742_v31 }
 0x8ca   : > { %v2120_v32 = vpop.eup %2119 }
 0x8cb   : > { %v1744_v34 = vmul.f32 %v2120_v32, %v1736_v26 }
 0x8cd   : > { %v1749_v36 = vmul.f32 %v1882_v33, %v1744_v34 }
 0x8cf   : > { %v1754_v37 = vadd.f32 %v1883_v35, %v1749_v36 }
 0x8d1   : > { %1755 = vst.msk [vmem:[%s310_s25] sm:$0xff] %vm334_vm0, %v1754_v37 }
 0x8d2   : > { %2134 = shalt.err (!%p2131_p5)
}
 0x8d3   : > { %s2135_s19 = scalar_lea.hbm %s1769_s14, 128  ;;  %s2139_s24 = scalar_lea.hbm %s2572_s8, 256 }
 0x8d4   : > { %p2136_p6 = scmp.ne.s32.totalorder %s1769_s14, %s2135_s19  ;;  %p2140_p10 = scmp.lt.s32.totalorder %s1769_s14, %s2572_s8 }
 0x8d5   : > { %p2141_p11 = scmp.lt.s32.totalorder %s2139_s24, %s2135_s19 }
 0x8d6   : > { %p2137_p7 = pnand %p2136_p6, %p2287_p4 }
 0x8d7   : > { %p2142_p12 = por %p2141_p11, %p2140_p10 }
 0x8d8   : > { %p2138_p9 = pneg %p2137_p7 }
 0x8da   : > { %p2143_p13 = pnand %p2142_p12, %p2138_p9 }
 0x8dc   : > { %2146 = shalt.err (!%p2143_p13)
}
 0x8dd   : > { %2042 = dma.vmem_to_hbm [thread:$0]  (%p2287_p4), %s1772_s26, 128, %s1769_s14, %s1757_s0  }
 0x8de PF: > { %p2048_p0 = scmp.ge.s32.totalorder %s2197_s10, 2  ;;  %s1783_s12 = sand.u32 1, %s2177_s27  }
 0x8df   : > { %s1784_s20 = scalar_lea.sflag [#allocation4], %s1783_s12 }
 0x8e0   : > { %p2045_p1 = pnand %p2048_p0, %p2294_p8 }
 0x8e2   : > { %p2046_p2 = pneg %p2045_p1 }
 0x8e4   : > { %2172 = dma.done.wait (%p2046_p2), %s1784_s20, 128  }
 0x8e5   : > { %2174 = vsyncadd (%p2046_p2), %s1784_s20, 4294967168  ;;  %s21_s10 = sadd.s32 1, %s2197_s10   ;;  %s2577_s27 = smov %s2181_s28 }
 0x8e6   : > { %p18_p3 = scmp.ge.s32.totalorder %s21_s10, 4   ;;  %s2578_s28 = smov %s2185_s29 }
 0x8e7   : > { %s2579_s29 = smov %s2300_s18  ;;  %s2580_s30 = smov %s2193_s9 }
 0x8e8   : > { %s2581_s9 = smov %s2583_s13  ;;  %20 = sbr.rel (!%p18_p3) target bundleno = 6 (0x6), region = 93 }
 0x8ed   :  { %1789 = vsyncpa [#allocation4], 1 }
 0x8ee   :  { %1791 = vsyncpa [#allocation4 + $0x1], 1 }

// kernel: tpu_custom_call.1
= control target key start
LH: loop header
LB: loop body
LE: loop exit
PB: predicated region body
PF: predicated region fallthrough
CT: control target
= control target key end

     0   :  { %s2564_s0 = inlined_call_operand.vmem [shape: f32[2,8,32], index: 0, kind: input, shape index: {}]   ;;  %s2565_s1 = inlined_call_operand.vmem [shape: f32[32,32], index: 1, kind: input, shape index: {}]   ;;  %s2566_s2 = inlined_call_operand.vmem [shape: f32[64,32], index: 2, kind: input, shape index: {}]   ;;  %s2567_s3 = inlined_call_operand.vmem [shape: f32[32,32], index: 3, kind: input, shape index: {}]   ;;  %s2568_s4 = inlined_call_operand.vmem [shape: f32[32,64], index: 4, kind: input, shape index: {}]   ;;  %s2569_s5 = inlined_call_operand.vmem [shape: f32[64,32], index: 5, kind: input, shape index: {}]   ;;  %s2570_s6 = inlined_call_operand.vmem [shape: f32[1,64], index: 6, kind: input, shape index: {}]   ;;  %s2571_s7 = inlined_call_operand.vmem [shape: f32[8,32], index: 7, kind: input, shape index: {}]   ;;  %s2572_s8 = inlined_call_operand.hbm [shape: f32[2,8,32], index: 8, kind: output, shape index: {}]  }
   0x1   :  { %2573 = sst [smem:[#allocation6_spill]] %s2564_s0 }
   0x2   :  { %13 = vsyncpa [#allocation4], 0 }
   0x3   :  { %15 = vsyncpa [#allocation4 + $0x1], 0  ;;  %s2247_s27 = smov 0   ;;  %s2249_s28 = smov 0  }
   0x4   :  { %s2251_s29 = smov 0   ;;  %s2253_s30 = smov 0  }
   0x5   :  { %s2255_s9 = smov 0   ;;  %s2257_s10 = smov 0  }
   0x6 LB: > { %s1841_s11 = sadd.s32 4294967295, %s2197_s10   ;;  %s1842_s12 = sadd.s32 4294967294, %s2197_s10   ;;  %s2197_s10 = sphi %s2257_s10, %s21_s10   ;;  %s2193_s9 = sphi %s2255_s9, %s2581_s9   ;;  %s2189_s30 = sphi %s2253_s30, %s2580_s30   ;;  %s2185_s29 = sphi %s2251_s29, %s2579_s29   ;;  %s2181_s28 = sphi %s2249_s28, %s2578_s28   ;;  %s2177_s27 = sphi %s2247_s27, %s2577_s27  }
   0x7   : > { %s33_s13 = sadd.s32 1, %s2193_s9  ;;  %s215_s14 = sadd.s32 1, %s2185_s29 }
   0x8   : > { %p35_p0 = scmp.ge.s32.totalorder %s33_s13, 2  ;;  %p225_p1 = scmp.ne.s32.totalorder %s2185_s29, %s2181_s28 }
   0x9   : > { %p226_p2 = scmp.eq.s32.totalorder %s1841_s11, 1  ;;  %p231_p3 = scmp.ne.s32.totalorder %s2181_s28, %s2177_s27 }
   0xa   : > { %s2583_s13 = smov (%p35_p0, %s33_s13), 0  ;;  %p232_p5 = scmp.eq.s32.totalorder %s1842_s12, 1 }
   0xb   : > { %p2287_p4 = por %p226_p2, %p225_p1  ;;  %s210_s16 = ssub.s32 %s2193_s9, %s2583_s13 }
   0xc   : > { %p1845_p6 = scmp.ge.s32.totalorder %s2197_s10, 1  ;;  %p213_p7 = scmp.eq.s32.totalorder %s210_s16, 0 }
   0xd   : > { %p2294_p8 = por %p232_p5, %p231_p3  ;;  %p278_p9 = scmp.lt.s32.totalorder %s2197_s10, 3 }
   0xe   : > { %s2300_s18 = scalar_select %p213_p7, %s2185_s29, %s215_s14  }
   0xf   : > { %p279_p10 = pnand %p1845_p6, %p278_p9 }
  0x10   : > { %p311_p11 = scmp.lt.s32.totalorder (!%p279_p10), %s2189_s30, 1  ;;  %s2576_s0 = sld [smem:[#allocation6_spill]] (!%p279_p10) }
  0x11   : > { %282 = sbr.rel (%p279_p10) target bundleno = 2270 (0x8de), region = 52  ;;  %s308_s16 = sand.u32 (!%p279_p10), 1, %s2181_s28  }
  0x12   : > { %s1846_s19 = sshll.u32 (!%p279_p10), %s308_s16, 3 }
  0x13   : > { %s310_s25 = scalar_lea.vmem (!%p279_p10), [#allocation3], %s1846_s19 }
  0x14   : > { %s1771_s26 = sshll.u32 (!%p279_p10), %s310_s25, 4  ;;  %s1772_s26 = int_to_ptr.vmem [resolvable:$true] %s1771_s26 }
  0x15   : > { %s2121_s20 = scalar_lea.vmem (!%p279_p10), %s1772_s26, 128 }
  0x16   : > { %vm334_vm0 = vcmask 261120   ;;  %v330_v0 = vld [vmem:[%s2566_s2 + $0x20] sm:$0xff]  ;;  %s312_s21 = scalar_select %p311_p11, %s2189_s30, 1  ;;  %v331_v3 = vld [vmem:[%s2566_s2 + $0x28] sm:$0xff]  ;;  %v332_v5 = vld [vmem:[%s2566_s2 + $0x30] sm:$0xff]  ;;  %v2199_v13 = vmov 0.0  }
  0x17   : > { %1945 = vmatprep.mubr.msk.f32.mxu1 %vm334_vm0, %v330_v0  ;;  %v326_v1 = vld [vmem:[%s2566_s2] sm:$0xff]  ;;  %v327_v4 = vld [vmem:[%s2566_s2 + $0x8] sm:$0xff]  ;;  %v328_v6 = vld [vmem:[%s2566_s2 + $0x10] sm:$0xff]  ;;  %vm2200_vm1 = vmmov 0   ;;  %vm467_vm2 = vcmask 64512   ;;  %vm1657_vm3 = vcmask 523264   ;;  %p2122_p12 = scmp.ne.s32.totalorder %s1772_s26, %s2121_s20 }
  0x18   : > { %1939 = vmatprep.mubr.msk.f32.mxu0 %vm334_vm0, %v326_v1  ;;  %s1847_s24 = sshll.u32 %s312_s21, 3  ;;  %v333_v7 = vld [vmem:[%s2566_s2 + $0x38] sm:$0xff]  ;;  %v479_v9 = vld [vmem:[%s2565_s1] sm:$0xff]  ;;  %v480_v10 = vld [vmem:[%s2565_s1 + $0x8] sm:$0xff]  ;;  %s2201_s21 = smov [#allocation3]  }
  0x19   : > { %s314_s11 = scalar_lea.vmem %s2576_s0, %s1847_s24  ;;  %v329_v8 = vld [vmem:[%s2566_s2 + $0x18] sm:$0xff]  ;;  %v481_v11 = vld [vmem:[%s2565_s1 + $0x10] sm:$0xff]  ;;  %s1885_s24 = sshll.u32 %s2189_s30, 7 }
  0x1a   : > { %v2315_v2 = vld [vmem:[%s314_s11] sm:$0xff]  ;;  %v482_v12 = vld [vmem:[%s2565_s1 + $0x18] sm:$0xff]  ;;  %s1769_s14 = scalar_lea.hbm %s2572_s8, %s1885_s24  ;;  %s1757_s0 = scalar_lea.sflag [#allocation4], %s308_s16 }
  0x1b   : > { %2040 = vmatprep.subr.msk.mxu1 %vm334_vm0, %v2315_v2  ;;  %1937 = vmatprep.subr.msk.mxu0 %vm334_vm0, %v2315_v2  ;;  %p2123_p13 = pnand %p2122_p12, %p2287_p4  ;;  %s2125_s22 = sshll.u32 %s2201_s21, 4  ;;  %s2126_s22 = int_to_ptr.vmem [resolvable:$false] %s2125_s22 }
  0x1c   : > { %2041 = vmatpush3.xpose.msk.msra.mxu1 %vm334_vm0, %v2315_v2  ;;  %1938 = vmatpush3.xpose.msk.msra.mxu0 %vm334_vm0, %v2315_v2  ;;  %s2127_s30 = scalar_lea.vmem %s2126_s22, 256  ;;  %p2128_p1 = scmp.lt.s32.totalorder %s1772_s26, %s2126_s22 }
  0x1d   : > { %1951 = vmatprep.subr.msk.mxu1 %vm334_vm0, %v2315_v2  ;;  %1969 = vmatprep.subr.mxu0 %v2199_v13  ;;  %p2124_p0 = pneg %p2123_p13  ;;  %p2129_p2 = scmp.lt.s32.totalorder %s2127_s30, %s2121_s20 }
  0x1f   : > { %1946 = vmatmul.mubr.msk.f32.vlgmr.msra.gmra.mxu1 %vm334_vm0, %v331_v3  ;;  %1940 = vmatmul.mubr.msk.f32.vlgmr.msra.gmra.mxu0 %vm334_vm0, %v327_v4  ;;  %p2130_p3 = por %p2129_p2, %p2128_p1 }
  0x20   : > { %1952 = vmatpush3.xpose.msk.msra.mxu1 %vm334_vm0, %v2315_v2  ;;  %1948 = vmatprep.mubr.msk.f32.mxu1 %vm334_vm0, %v332_v5 }
  0x21   : > { %1942 = vmatprep.mubr.msk.f32.mxu0 %vm334_vm0, %v328_v6  ;;  %1959 = vmatprep.subr.mxu1 %v2199_v13  ;;  %p2131_p5 = pnand %p2130_p3, %p2124_p0 }
  0x23   : > { %1949 = vmatmul.mubr.msk.f32.gmra.mxu1 %vm334_vm0, %v333_v7  ;;  %1943 = vmatmul.mubr.msk.f32.gmra.mxu0 %vm334_vm0, %v329_v8  ;;  %v1421_v7 = vld [vmem:[%s2567_s3 + $0x18] sm:$0xff]  ;;  %v1420_v8 = vld [vmem:[%s2567_s3 + $0x10] sm:$0xff] }
  0x24   : > { %1953 = vmatprep.mubr.msk.f32.mxu1 %vm334_vm0, %v479_v9  ;;  %1971 = vmatprep.mubr.msk.f32.mxu0 %vm2200_vm1, %v2199_v13  ;;  %v1419_v9 = vld [vmem:[%s2567_s3 + $0x8] sm:$0xff] }
  0x27   : > { %1954 = vmatmul.mubr.msk.f32.vlgmr.msra.gmra.mxu1 %vm334_vm0, %v480_v10  ;;  %v1418_v10 = vld [vmem:[%s2567_s3] sm:$0xff] }
  0x28   : > { %1956 = vmatprep.mubr.msk.f32.mxu1 %vm334_vm0, %v481_v11 }
  0x2b   : > { %1957 = vmatmul.mubr.msk.f32.gmra.mxu1 %vm334_vm0, %v482_v12 }
  0x2c   : > { %1961 = vmatprep.mubr.msk.f32.mxu1 %vm2200_vm1, %v2199_v13 }
  0xdf   : > { %v1947_v14 = vpop.f32.mrf.mxu1  ;;  %v1941_v15 = vpop.f32.mrf.mxu0 }
  0xe0   : > { %473 = vst.msk [vmem:[#allocation2 + $0x28] sm:$0xff] %vm467_vm2, %v1947_v14  ;;  %469 = vst.msk [vmem:[#allocation2 + $0x8] sm:$0xff] %vm467_vm2, %v1941_v15  ;;  %v1362_v14 = vlaneseq }
  0xe1   : > { %v448_v16 = vpop.f32.mrf.mxu1  ;;  %v428_v17 = vpop.f32.mrf.mxu0 }
  0xe2   : > { %472 = vst.msk [vmem:[#allocation2 + $0x20] sm:$0xff] %vm467_vm2, %v448_v16  ;;  %468 = vst.msk [vmem:[#allocation2] sm:$0xff] %vm467_vm2, %v428_v17  ;;  %v1363_v16 = vand.u32 127, %v1362_v14  ;;  %v1365_v17 = vshrl.u32 %v1362_v14, 7 }
  0xe3   : > { %v1950_v18 = vpop.f32.mrf.mxu1  ;;  %v1944_v19 = vpop.f32.mrf.mxu0 }
  0xe4   : > { %475 = vst.msk [vmem:[#allocation2 + $0x38] sm:$0xff] %vm467_vm2, %v1950_v18  ;;  %471 = vst.msk [vmem:[#allocation2 + $0x18] sm:$0xff] %vm467_vm2, %v1944_v19  ;;  %v1366_v19 = vsub.s32 %v1363_v16, %v1365_v17 }
  0xe5   : > { %v458_v20 = vpop.f32.mrf.mxu1  ;;  %v438_v21 = vpop.f32.mrf.mxu0 }
  0xe6   : > { %474 = vst.msk [vmem:[#allocation2 + $0x30] sm:$0xff] %vm467_vm2, %v458_v20  ;;  %470 = vst.msk [vmem:[#allocation2 + $0x10] sm:$0xff] %vm467_vm2, %v438_v21 }
  0xe7   : > { %v1955_v22 = vpop.f32.mrf.mxu1  ;;  %v585_v29 = vld [vmem:[#allocation2 + $0x8] sm:$0xff] }
  0xe8   : > { %v590_v63 = vld [vmem:[#allocation2 + $0x28] sm:$0xff] }
  0xe9   : > { %v565_v23 = vpop.f32.mrf.mxu1  ;;  %v584_v24 = vld [vmem:[#allocation2] sm:$0xff] }
  0xea   : > { %593 = vxpose.xlu0.b32.start.end [1/1] (short) (narrow) %v565_v23, 8  ;;  %1960 = vmatpush3.msra.mxu1 %v584_v24  ;;  %v589_v60 = vld [vmem:[#allocation2 + $0x20] sm:$0xff] }
  0xeb   : > { %v1958_v25 = vpop.f32.mrf.mxu1  ;;  %1964 = vmatprep.subr.mxu1 %v2199_v13  ;;  %v587_v30 = vld [vmem:[#allocation2 + $0x18] sm:$0xff] }
  0xec   : > { %v592_v6 = vld [vmem:[#allocation2 + $0x38] sm:$0xff] }
  0xed   : > { %v575_v26 = vpop.f32.mrf.mxu1  ;;  %v586_v27 = vld [vmem:[#allocation2 + $0x10] sm:$0xff] }
  0xee   : > { %699 = vxpose.xlu0.b32.start.end [1/1] (short) (narrow) %v1955_v22, 8  ;;  %804 = vxpose.xlu1.b32.start.end [1/1] (short) (narrow) %v575_v26, 8  ;;  %v591_v3 = vld [vmem:[#allocation2 + $0x30] sm:$0xff] }
  0xef   : > { %1970 = vmatpush3.msra.mxu0 %v586_v27 }
  0xf0   : > { %1979 = vmatprep.subr.mxu0 %v2199_v13 }
  0xf2   : > { %909 = vxpose.xlu1.b32.start.end [1/1] (short) (narrow) %v1958_v25, 8 }
 0x166   : > { %v609_v28 = vpop.trf.xlu0 }
 0x167   : > { %1962 = vmatmul.mubr.msk.f32.vlgmr.msra.gmra.mxu1 %vm467_vm2, %v609_v28 }
 0x168   : > { %1965 = vmatpush3.msra.mxu1 %v585_v29  ;;  %1966 = vmatprep.mubr.msk.f32.mxu1 %vm2200_vm1, %v2199_v13 }
 0x169   : > { %1974 = vmatprep.subr.mxu1 %v2199_v13 }
 0x16a   : > { %v715_v31 = vpop.trf.xlu0  ;;  %v820_v32 = vpop.trf.xlu1 }
 0x16b   : > { %1967 = vmatmul.mubr.msk.f32.vlgmr.msra.gmra.mxu1 %vm467_vm2, %v715_v31  ;;  %1972 = vmatmul.mubr.msk.f32.vlgmr.msra.gmra.mxu0 %vm467_vm2, %v820_v32 }
 0x16c   : > { %1975 = vmatpush3.msra.mxu1 %v587_v30  ;;  %1976 = vmatprep.mubr.msk.f32.mxu1 %vm2200_vm1, %v2199_v13 }
 0x16d   : > { %1981 = vmatprep.mubr.msk.f32.mxu0 %vm2200_vm1, %v2199_v13  ;;  %1984 = vmatprep.subr.mxu1 %v2199_v13 }
 0x16e   : > { %v925_v33 = vpop.trf.xlu1 }
 0x16f   : > { %1977 = vmatmul.mubr.msk.f32.vlgmr.msra.gmra.mxu1 %vm467_vm2, %v925_v33 }
 0x170   : > { %1986 = vmatprep.mubr.msk.f32.mxu1 %vm2200_vm1, %v2199_v13 }
 0x227   : > { %v695_v34 = vpop.f32.mrf.mxu1 }
 0x228   : > { %v1014_v35 = vsel %vm467_vm2, %v695_v34, -inf }
 0x229   : > { %1015 = vmax.xlane.f32.xlu0 %v1014_v35  ;;  %v1963_v36 = vpop.f32.mrf.mxu1 }
 0x22b   : > { %v800_v37 = vpop.f32.mrf.mxu1  ;;  %v905_v38 = vpop.f32.mrf.mxu0 }
 0x22c   : > { %v1017_v39 = vsel %vm467_vm2, %v800_v37, -inf  ;;  %v1020_v42 = vsel %vm467_vm2, %v905_v38, -inf }
 0x22d   : > { %1018 = vmax.xlane.f32.xlu1 %v1017_v39  ;;  %v1968_v40 = vpop.f32.mrf.mxu1  ;;  %v1973_v41 = vpop.f32.mrf.mxu0 }
 0x22e   : > { %v1874_v41 = vld [vmem:[%s2571_s7] ss:$0 sm:$0xff] }
 0x22f   : > { %v1010_v43 = vpop.f32.mrf.mxu1 }
 0x230   : > { %v1023_v45 = vsel %vm467_vm2, %v1010_v43, -inf }
 0x231   : > { %1021 = vmax.xlane.f32.xlu1 %v1020_v42  ;;  %v1978_v44 = vpop.f32.mrf.mxu1 }
 0x235   : > { %1024 = vmax.xlane.f32.xlu1 %v1023_v45 }
 0x2b2   : > { %v1016_v46 = vpop.xlane.xlu0 %1015 }
 0x2b3   : > { %v1026_v47 = vsub.f32 %v695_v34, %v1016_v46 }
 0x2b5   : > { %v1030_v48 = vmul.f32 1.442695, %v1026_v47 }
 0x2b6   : > { %v1019_v49 = vpop.xlane.xlu1 %1018 }
 0x2b7   : > { %2099 = vpow2.f32 %v1030_v48  ;;  %v1027_v50 = vsub.f32 %v800_v37, %v1019_v49 }
 0x2b9   : > { %v1032_v51 = vmul.f32 1.442695, %v1027_v50 }
 0x2ba   : > { %v1022_v52 = vpop.xlane.xlu1 %1021 }
 0x2bb   : > { %2101 = vpow2.f32 %v1032_v51  ;;  %v1028_v53 = vsub.f32 %v905_v38, %v1022_v52  ;;  %v1559_v52 = vld [vmem:[%s2568_s4 + $0x18] sm:$0xff] }
 0x2bd   : > { %v1034_v54 = vmul.f32 1.442695, %v1028_v53  ;;  %v1557_v53 = vld [vmem:[%s2568_s4 + $0x8] sm:$0xff] }
 0x2be   : > { %v1025_v55 = vpop.xlane.xlu1 %1024 }
 0x2bf   : > { %2103 = vpow2.f32 %v1034_v54  ;;  %v1029_v56 = vsub.f32 %v1010_v43, %v1025_v55  ;;  %v1556_v54 = vld [vmem:[%s2568_s4] sm:$0xff] }
 0x2c1   : > { %v1036_v57 = vmul.f32 1.442695, %v1029_v56 }
 0x2c3   : > { %2105 = vpow2.f32 %v1036_v57 }
 0x2c4   : > { %v2100_v58 = vpop.eup %2099 }
 0x2c5   : > { %1980 = vmatpush3.xpose.msk.msra.mxu0 %vm467_vm2, %v2100_v58  ;;  %v1038_v59 = vsel %vm467_vm2, %v2100_v58, 0.0 }
 0x2c6   : > { %1039 = vadd.xlane.f32.xlu0 %v1038_v59  ;;  %1989 = vmatprep.subr.mxu0 %v2199_v13  ;;  %v1876_v59 = vld [vmem:[%s2571_s7 + $0x1] ss:$0 sm:$0xff] }
 0x2c8   : > { %v2102_v61 = vpop.eup %2101  ;;  %1982 = vmatmul.mubr.msk.f32.vlgmr.msra.gmra.mxu0 %vm467_vm2, %v589_v60 }
 0x2c9   : > { %1985 = vmatpush3.xpose.msk.msra.mxu1 %vm467_vm2, %v2102_v61  ;;  %v1041_v62 = vsel %vm467_vm2, %v2102_v61, 0.0  ;;  %1991 = vmatprep.mubr.msk.f32.mxu0 %vm2200_vm1, %v2199_v13  ;;  %v1877_v61 = vld [vmem:[%s2571_s7 + $0x2] ss:$0 sm:$0xff] }
 0x2ca   : > { %1042 = vadd.xlane.f32.xlu1 %v1041_v62  ;;  %1994 = vmatprep.subr.mxu1 %v2199_v13 }
 0x2cc   : > { %v2104_v0 = vpop.eup %2103  ;;  %1987 = vmatmul.mubr.msk.f32.vlgmr.msra.gmra.mxu1 %vm467_vm2, %v590_v63 }
 0x2cd   : > { %1990 = vmatpush3.xpose.msk.msra.mxu0 %vm467_vm2, %v2104_v0  ;;  %v1044_v1 = vsel %vm467_vm2, %v2104_v0, 0.0  ;;  %1996 = vmatprep.mubr.msk.f32.mxu1 %vm2200_vm1, %v2199_v13  ;;  %v1652_v0 = vld [vmem:[%s2569_s5 + $0x38] sm:$0xff] }
 0x2ce   : > { %1045 = vadd.xlane.f32.xlu0 %v1044_v1  ;;  %1999 = vmatprep.subr.mxu0 %v2199_v13  ;;  %v1651_v1 = vld [vmem:[%s2569_s5 + $0x30] sm:$0xff] }
 0x2d0   : > { %v2106_v4 = vpop.eup %2105  ;;  %1992 = vmatmul.mubr.msk.f32.vlgmr.msra.gmra.mxu0 %vm467_vm2, %v591_v3  ;;  %v1650_v3 = vld [vmem:[%s2569_s5 + $0x28] sm:$0xff] }
 0x2d1   : > { %1995 = vmatpush3.xpose.msk.msra.mxu1 %vm467_vm2, %v2106_v4  ;;  %v1047_v5 = vsel %vm467_vm2, %v2106_v4, 0.0  ;;  %2007 = vmatprep.mubr.msk.f32.mxu0 %vm2200_vm1, %v2199_v13  ;;  %v1649_v4 = vld [vmem:[%s2569_s5 + $0x20] sm:$0xff] }
 0x2d2   : > { %1048 = vadd.xlane.f32.xlu1 %v1047_v5  ;;  %2010 = vmatprep.subr.mxu1 %v2199_v13  ;;  %v1648_v5 = vld [vmem:[%s2569_s5 + $0x18] sm:$0xff] }
 0x2d3   : > { %2000 = vmatpush3.msra.mxu0 %v1421_v7  ;;  %v1646_v7 = vld [vmem:[%s2569_s5 + $0x8] sm:$0xff] }
 0x2d4   : > { %1997 = vmatmul.mubr.msk.f32.vlgmr.msra.gmra.mxu1 %vm467_vm2, %v592_v6  ;;  %2001 = vmatprep.subr.mxu0 %v2199_v13  ;;  %v1647_v6 = vld [vmem:[%s2569_s5 + $0x10] sm:$0xff] }
 0x2d5   : > { %2018 = vmatprep.mubr.msk.f32.mxu1 %vm2200_vm1, %v2199_v13  ;;  %2002 = vmatpush3.msra.mxu0 %v1420_v8  ;;  %v1645_v8 = vld [vmem:[%s2569_s5] sm:$0xff] }
 0x2d6   : > { %2003 = vmatprep.subr.mxu0 %v2199_v13  ;;  %2011 = vmatpush3.msra.mxu1 %v1559_v52 }
 0x2d7   : > { %2004 = vmatpush3.msra.mxu0 %v1419_v9  ;;  %2012 = vmatprep.subr.mxu1 %v2199_v13  ;;  %v1878_v9 = vld [vmem:[%s2570_s6] ss:$0 sm:$0xff] }
 0x2d8   : > { %2005 = vmatprep.subr.mxu0 %v2199_v13 }
 0x2d9   : > { %2006 = vmatpush3.msra.mxu0 %v1418_v10 }
 0x2da   : > { %2021 = vmatprep.subr.mxu0 %v2199_v13 }
 0x34f   : > { %v1040_v11 = vpop.xlane.xlu0 %1039 }
 0x350   : > { %2107 = vrcp.f32 %v1040_v11 }
 0x353   : > { %v1043_v12 = vpop.xlane.xlu1 %1042 }
 0x354   : > { %2109 = vrcp.f32 %v1043_v12 }
 0x357   : > { %v1046_v15 = vpop.xlane.xlu0 %1045 }
 0x358   : > { %2111 = vrcp.f32 %v1046_v15 }
 0x35b   : > { %v1049_v18 = vpop.xlane.xlu1 %1048 }
 0x35c   : > { %2113 = vrcp.f32 %v1049_v18 }
 0x35d   : > { %v2108_v20 = vpop.eup %2107 }
 0x35e   : > { %v1367_v21 = vrot.slane %v2108_v20, %v1366_v19 }
 0x361   : > { %v2110_v22 = vpop.eup %2109 }
 0x362   : > { %v1371_v26 = vrot.slane %v2110_v22, %v1366_v19 }
 0x365   : > { %v2112_v27 = vpop.eup %2111 }
 0x366   : > { %v1375_v31 = vrot.slane %v2112_v27, %v1366_v19 }
 0x369   : > { %v2114_v32 = vpop.eup %2113 }
 0x36a   : > { %v1379_v36 = vrot.slane %v2114_v32, %v1366_v19 }
 0x388   : > { %v1122_v23 = vpop.f32.mrf.mxu0 }
 0x389   : > { %v1414_v24 = vmul.f32 %v1367_v21, %v1122_v23 }
 0x38a   : > { %v1983_v25 = vpop.f32.mrf.mxu0 }
 0x38b   : > { %1426 = vxpose.xlu0.b32.start [1/4] (short) (narrow) %v1414_v24, 8 }
 0x38c   : > { %v1198_v28 = vpop.f32.mrf.mxu1 }
 0x38d   : > { %v1415_v29 = vmul.f32 %v1371_v26, %v1198_v28 }
 0x38e   : > { %v1988_v30 = vpop.f32.mrf.mxu1 }
 0x38f   : > { %1427 = vxpose.xlu0.b32.cont [2/4] (short) (narrow) %v1415_v29, 8 }
 0x390   : > { %v1274_v33 = vpop.f32.mrf.mxu0 }
 0x391   : > { %v1416_v34 = vmul.f32 %v1375_v31, %v1274_v33  ;;  %v1882_v33 = vld [vmem:[%s2571_s7 + $0x4] ss:$0 sm:$0xff] }
 0x392   : > { %v1993_v35 = vpop.f32.mrf.mxu0 }
 0x393   : > { %1428 = vxpose.xlu0.b32.cont [3/4] (short) (narrow) %v1416_v34, 8  ;;  %v1883_v35 = vld [vmem:[%s2571_s7 + $0x5] ss:$0 sm:$0xff] }
 0x394   : > { %v1350_v37 = vpop.f32.mrf.mxu1 }
 0x395   : > { %v1417_v38 = vmul.f32 %v1379_v36, %v1350_v37 }
 0x396   : > { %v1998_v39 = vpop.f32.mrf.mxu1 }
 0x397   : > { %1429 = vxpose.xlu0.b32.end [4/4] (short) (narrow) %v1417_v38, 8 }
 0x407   : > { %v1442_v40 = vpop.trf.xlu0 }
 0x408   : > { %2008 = vmatmul.mubr.msk.f32.vlgmr.msra.gmra.mxu0 %vm334_vm0, %v1442_v40 }
 0x409   : > { %2037 = vmatprep.mubr.msk.f32.mxu0 %vm2200_vm1, %v2199_v13  ;;  %2022 = vmatpush3.msra.mxu0 %v1652_v0 }
 0x40a   : > { %2023 = vmatprep.subr.mxu0 %v2199_v13 }
 0x40b   : > { %2024 = vmatpush3.msra.mxu0 %v1651_v1 }
 0x40c   : > { %2025 = vmatprep.subr.mxu0 %v2199_v13 }
 0x40d   : > { %2026 = vmatpush3.msra.mxu0 %v1650_v3 }
 0x40e   : > { %2027 = vmatprep.subr.mxu0 %v2199_v13 }
 0x40f   : > { %2028 = vmatpush3.msra.mxu0 %v1649_v4 }
 0x410   : > { %2029 = vmatprep.subr.mxu0 %v2199_v13 }
 0x411   : > { %2030 = vmatpush3.msra.mxu0 %v1648_v5 }
 0x412   : > { %2031 = vmatprep.subr.mxu0 %v2199_v13 }
 0x413   : > { %2032 = vmatpush3.msra.mxu0 %v1647_v6 }
 0x414   : > { %2033 = vmatprep.subr.mxu0 %v2199_v13 }
 0x415   : > { %2034 = vmatpush3.msra.mxu0 %v1646_v7 }
 0x416   : > { %2035 = vmatprep.subr.mxu0 %v2199_v13 }
 0x417   : > { %2036 = vmatpush3.msra.mxu0 %v1645_v8 }
 0x4c8   : > { %v1527_v42 = vpop.f32.mrf.mxu0 }
 0x4c9   : > { %v1528_v43 = vadd.f32 %v1874_v41, %v1527_v42 }
 0x4ca   : > { %v2009_v44 = vpop.f32.mrf.mxu0 }
 0x4cb   : > { %v2450_v45 = vadd.f32 %v1528_v43, %v2315_v2  ;;  %v1558_v2 = vld [vmem:[%s2568_s4 + $0x10] sm:$0xff] }
 0x4cc   : > { %2013 = vmatpush3.msra.mxu1 %v1558_v2 }
 0x4cd   : > { %v1532_v46 = vsel %vm334_vm0, %v2450_v45, 0.0  ;;  %2014 = vmatprep.subr.mxu1 %v2199_v13 }
 0x4ce   : > { %1533 = vadd.xlane.f32.xlu1 %v1532_v46  ;;  %2015 = vmatpush3.msra.mxu1 %v1557_v53 }
 0x4cf   : > { %2016 = vmatprep.subr.mxu1 %v2199_v13  ;;  %v1880_v13 = vld [vmem:[%s2571_s7 + $0x3] ss:$0 sm:$0xff] }
 0x4d0   : > { %2017 = vmatpush3.msra.mxu1 %v1556_v54 }
 0x557   : > { %v1534_v47 = vpop.xlane.xlu1 %1533 }
 0x558   : > { %v1536_v48 = vmul.f32 0.03125, %v1534_v47 }
 0x55a   : > { %v1537_v49 = vsub.f32 %v2450_v45, %v1536_v48 }
 0x55c   : > { %v1538_v50 = vmul.f32 %v1537_v49, %v1537_v49 }
 0x55e   : > { %v1539_v51 = vsel %vm334_vm0, %v1538_v50, 0.0 }
 0x55f   : > { %1540 = vadd.xlane.f32.xlu1 %v1539_v51 }
 0x5e8   : > { %v1541_v55 = vpop.xlane.xlu1 %1540 }
 0x5e9   : > { %v1542_v56 = vmul.f32 0.03125, %v1541_v55 }
 0x5eb   : > { %v1543_v57 = vadd.f32 1e-05, %v1542_v56 }
 0x5ed   : > { %2115 = vrsqrt.f32 %v1543_v57 }
 0x5fa   : > { %v2116_v58 = vpop.eup %2115 }
 0x5fb   : > { %v1545_v60 = vmul.f32 %v2116_v58, %v1537_v49 }
 0x5fd   : > { %v1550_v62 = vmul.f32 %v1876_v59, %v1545_v60 }
 0x5ff   : > { %v1555_v63 = vadd.f32 %v1877_v61, %v1550_v62 }
 0x601   : > { %2019 = vmatmul.mubr.msk.f32.vlgmr.msra.gmra.mxu1 %vm334_vm0, %v1555_v63 }
 0x6c1   : > { %v1636_v10 = vpop.f32.mrf.mxu1 }
 0x6c2   : > { %v1637_v11 = vadd.f32 %v1878_v9, %v1636_v10 }
 0x6c3   : > { %v2020_v12 = vpop.f32.mrf.mxu1 }
 0x6c4   : > { %v1641_v14 = vmul.f32 0.70710677, %v1637_v11  ;;  %v1640_v16 = vmul.f32 0.5, %v1637_v11 }
 0x6c6   : > { %2117 = verf.f32 %v1641_v14 }
 0x6d3   : > { %v2118_v15 = vpop.eup %2117 }
 0x6d4   : > { %v1643_v17 = vadd.f32 1.0, %v2118_v15 }
 0x6d6   : > { %v1644_v18 = vmul.f32 %v1643_v17, %v1640_v16 }
 0x6d8   : > { %2038 = vmatmul.mubr.msk.f32.vlgmr.msra.gmra.mxu0 %vm1657_vm3, %v1644_v18 }
 0x798   : > { %v1727_v19 = vpop.f32.mrf.mxu0 }
 0x799   : > { %v1728_v20 = vadd.f32 %v1880_v13, %v1727_v19 }
 0x79a   : > { %v2039_v21 = vpop.f32.mrf.mxu0 }
 0x79b   : > { %v1731_v22 = vadd.f32 %v1728_v20, %v2450_v45 }
 0x79d   : > { %v1732_v23 = vsel %vm334_vm0, %v1731_v22, 0.0 }
 0x79e   : > { %1733 = vadd.xlane.f32.xlu1 %v1732_v23 }
 0x827   : > { %v1734_v24 = vpop.xlane.xlu1 %1733 }
 0x828   : > { %v1735_v25 = vmul.f32 0.03125, %v1734_v24 }
 0x82a   : > { %v1736_v26 = vsub.f32 %v1731_v22, %v1735_v25 }
 0x82c   : > { %v1737_v27 = vmul.f32 %v1736_v26, %v1736_v26 }
 0x82e   : > { %v1738_v28 = vsel %vm334_vm0, %v1737_v27, 0.0 }
 0x82f   : > { %1739 = vadd.xlane.f32.xlu1 %v1738_v28 }
 0x8b8   : > { %v1740_v29 = vpop.xlane.xlu1 %1739 }
 0x8b9   : > { %v1741_v30 = vmul.f32 0.03125, %v1740_v29 }
 0x8bb   : > { %v1742_v31 = vadd.f32 1e-05, %v1741_v30 }
 0x8bd   : > { %2119 = vrsqrt.f32 %v1742_v31 }
 0x8ca   : > { %v2120_v32 = vpop.eup %2119 }
 0x8cb   : > { %v1744_v34 = vmul.f32 %v2120_v32, %v1736_v26 }
 0x8cd   : > { %v1749_v36 = vmul.f32 %v1882_v33, %v1744_v34 }
 0x8cf   : > { %v1754_v37 = vadd.f32 %v1883_v35, %v1749_v36 }
 0x8d1   : > { %1755 = vst.msk [vmem:[%s310_s25] sm:$0xff] %vm334_vm0, %v1754_v37 }
 0x8d2   : > { %2134 = shalt.err (!%p2131_p5)
}
 0x8d3   : > { %s2135_s19 = scalar_lea.hbm %s1769_s14, 128  ;;  %s2139_s24 = scalar_lea.hbm %s2572_s8, 256 }
 0x8d4   : > { %p2136_p6 = scmp.ne.s32.totalorder %s1769_s14, %s2135_s19  ;;  %p2140_p10 = scmp.lt.s32.totalorder %s1769_s14, %s2572_s8 }
 0x8d5   : > { %p2141_p11 = scmp.lt.s32.totalorder %s2139_s24, %s2135_s19 }
 0x8d6   : > { %p2137_p7 = pnand %p2136_p6, %p2287_p4 }
 0x8d7   : > { %p2142_p12 = por %p2141_p11, %p2140_p10 }
 0x8d8   : > { %p2138_p9 = pneg %p2137_p7 }
 0x8da   : > { %p2143_p13 = pnand %p2142_p12, %p2138_p9 }
 0x8dc   : > { %2146 = shalt.err (!%p2143_p13)
}
 0x8dd   : > { %2042 = dma.vmem_to_hbm [thread:$0]  (%p2287_p4), %s1772_s26, 128, %s1769_s14, %s1757_s0  }
 0x8de PF: > { %p2048_p0 = scmp.ge.s32.totalorder %s2197_s10, 2  ;;  %s1783_s12 = sand.u32 1, %s2177_s27  }
 0x8df   : > { %s1784_s20 = scalar_lea.sflag [#allocation4], %s1783_s12 }
 0x8e0   : > { %p2045_p1 = pnand %p2048_p0, %p2294_p8 }
 0x8e2   : > { %p2046_p2 = pneg %p2045_p1 }
 0x8e4   : > { %2172 = dma.done.wait (%p2046_p2), %s1784_s20, 128  }
 0x8e5   : > { %2174 = vsyncadd (%p2046_p2), %s1784_s20, 4294967168  ;;  %s21_s10 = sadd.s32 1, %s2197_s10   ;;  %s2577_s27 = smov %s2181_s28 }
 0x8e6   : > { %p18_p3 = scmp.ge.s32.totalorder %s21_s10, 4   ;;  %s2578_s28 = smov %s2185_s29 }
 0x8e7   : > { %s2579_s29 = smov %s2300_s18  ;;  %s2580_s30 = smov %s2193_s9 }
 0x8e8   : > { %s2581_s9 = smov %s2583_s13  ;;  %20 = sbr.rel (!%p18_p3) target bundleno = 6 (0x6), region = 93 }
 0x8ed   :  { %1789 = vsyncpa [#allocation4], 1 }
 0x8ee   :  { %1791 = vsyncpa [#allocation4 + $0x1], 1 }

// kernel: tpu_custom_call.1
= control target key start
LH: loop header
LB: loop body
LE: loop exit
PB: predicated region body
PF: predicated region fallthrough
CT: control target
= control target key end

     0   :  { %s2564_s0 = inlined_call_operand.vmem [shape: f32[2,8,32], index: 0, kind: input, shape index: {}]   ;;  %s2565_s1 = inlined_call_operand.vmem [shape: f32[32,32], index: 1, kind: input, shape index: {}]   ;;  %s2566_s2 = inlined_call_operand.vmem [shape: f32[64,32], index: 2, kind: input, shape index: {}]   ;;  %s2567_s3 = inlined_call_operand.vmem [shape: f32[32,32], index: 3, kind: input, shape index: {}]   ;;  %s2568_s4 = inlined_call_operand.vmem [shape: f32[32,64], index: 4, kind: input, shape index: {}]   ;;  %s2569_s5 = inlined_call_operand.vmem [shape: f32[64,32], index: 5, kind: input, shape index: {}]   ;;  %s2570_s6 = inlined_call_operand.vmem [shape: f32[1,64], index: 6, kind: input, shape index: {}]   ;;  %s2571_s7 = inlined_call_operand.vmem [shape: f32[8,32], index: 7, kind: input, shape index: {}]   ;;  %s2572_s8 = inlined_call_operand.hbm [shape: f32[2,8,32], index: 8, kind: output, shape index: {}]  }
   0x1   :  { %2573 = sst [smem:[#allocation6_spill]] %s2564_s0 }
   0x2   :  { %13 = vsyncpa [#allocation4], 0 }
   0x3   :  { %15 = vsyncpa [#allocation4 + $0x1], 0  ;;  %s2247_s27 = smov 0   ;;  %s2249_s28 = smov 0  }
   0x4   :  { %s2251_s29 = smov 0   ;;  %s2253_s30 = smov 0  }
   0x5   :  { %s2255_s9 = smov 0   ;;  %s2257_s10 = smov 0  }
   0x6 LB: > { %s1841_s11 = sadd.s32 4294967295, %s2197_s10   ;;  %s1842_s12 = sadd.s32 4294967294, %s2197_s10   ;;  %s2197_s10 = sphi %s2257_s10, %s21_s10   ;;  %s2193_s9 = sphi %s2255_s9, %s2581_s9   ;;  %s2189_s30 = sphi %s2253_s30, %s2580_s30   ;;  %s2185_s29 = sphi %s2251_s29, %s2579_s29   ;;  %s2181_s28 = sphi %s2249_s28, %s2578_s28   ;;  %s2177_s27 = sphi %s2247_s27, %s2577_s27  }
   0x7   : > { %s33_s13 = sadd.s32 1, %s2193_s9  ;;  %s215_s14 = sadd.s32 1, %s2185_s29 }
   0x8   : > { %p35_p0 = scmp.ge.s32.totalorder %s33_s13, 2  ;;  %p225_p1 = scmp.ne.s32.totalorder %s2185_s29, %s2181_s28 }
   0x9   : > { %p226_p2 = scmp.eq.s32.totalorder %s1841_s11, 1  ;;  %p231_p3 = scmp.ne.s32.totalorder %s2181_s28, %s2177_s27 }
   0xa   : > { %s2583_s13 = smov (%p35_p0, %s33_s13), 0  ;;  %p232_p5 = scmp.eq.s32.totalorder %s1842_s12, 1 }
   0xb   : > { %p2287_p4 = por %p226_p2, %p225_p1  ;;  %s210_s16 = ssub.s32 %s2193_s9, %s2583_s13 }
   0xc   : > { %p1845_p6 = scmp.ge.s32.totalorder %s2197_s10, 1  ;;  %p213_p7 = scmp.eq.s32.totalorder %s210_s16, 0 }
   0xd   : > { %p2294_p8 = por %p232_p5, %p231_p3  ;;  %p278_p9 = scmp.lt.s32.totalorder %s2197_s10, 3 }
   0xe   : > { %s2300_s18 = scalar_select %p213_p7, %s2185_s29, %s215_s14  }
   0xf   : > { %p279_p10 = pnand %p1845_p6, %p278_p9 }
  0x10   : > { %p311_p11 = scmp.lt.s32.totalorder (!%p279_p10), %s2189_s30, 1  ;;  %s2576_s0 = sld [smem:[#allocation6_spill]] (!%p279_p10) }
  0x11   : > { %282 = sbr.rel (%p279_p10) target bundleno = 2270 (0x8de), region = 52  ;;  %s308_s16 = sand.u32 (!%p279_p10), 1, %s2181_s28  }
  0x12   : > { %s1846_s19 = sshll.u32 (!%p279_p10), %s308_s16, 3 }
  0x13   : > { %s310_s25 = scalar_lea.vmem (!%p279_p10), [#allocation3], %s1846_s19 }
  0x14   : > { %s1771_s26 = sshll.u32 (!%p279_p10), %s310_s25, 4  ;;  %s1772_s26 = int_to_ptr.vmem [resolvable:$true] %s1771_s26 }
  0x15   : > { %s2121_s20 = scalar_lea.vmem (!%p279_p10), %s1772_s26, 128 }
  0x16   : > { %vm334_vm0 = vcmask 261120   ;;  %v330_v0 = vld [vmem:[%s2566_s2 + $0x20] sm:$0xff]  ;;  %s312_s21 = scalar_select %p311_p11, %s2189_s30, 1  ;;  %v331_v3 = vld [vmem:[%s2566_s2 + $0x28] sm:$0xff]  ;;  %v332_v5 = vld [vmem:[%s2566_s2 + $0x30] sm:$0xff]  ;;  %v2199_v13 = vmov 0.0  }
  0x17   : > { %1945 = vmatprep.mubr.msk.f32.mxu1 %vm334_vm0, %v330_v0  ;;  %v326_v1 = vld [vmem:[%s2566_s2] sm:$0xff]  ;;  %v327_v4 = vld [vmem:[%s2566_s2 + $0x8] sm:$0xff]  ;;  %v328_v6 = vld [vmem:[%s2566_s2 + $0x10] sm:$0xff]  ;;  %vm2200_vm1 = vmmov 0   ;;  %vm467_vm2 = vcmask 64512   ;;  %vm1657_vm3 = vcmask 523264   ;;  %p2122_p12 = scmp.ne.s32.totalorder %s1772_s26, %s2121_s20 }
  0x18   : > { %1939 = vmatprep.mubr.msk.f32.mxu0 %vm334_vm0, %v326_v1  ;;  %s1847_s24 = sshll.u32 %s312_s21, 3  ;;  %v333_v7 = vld [vmem:[%s2566_s2 + $0x38] sm:$0xff]  ;;  %v479_v9 = vld [vmem:[%s2565_s1] sm:$0xff]  ;;  %v480_v10 = vld [vmem:[%s2565_s1 + $0x8] sm:$0xff]  ;;  %s2201_s21 = smov [#allocation3]  }
  0x19   : > { %s314_s11 = scalar_lea.vmem %s2576_s0, %s1847_s24  ;;  %v329_v8 = vld [vmem:[%s2566_s2 + $0x18] sm:$0xff]  ;;  %v481_v11 = vld [vmem:[%s2565_s1 + $0x10] sm:$0xff]  ;;  %s1885_s24 = sshll.u32 %s2189_s30, 7 }
  0x1a   : > { %v2315_v2 = vld [vmem:[%s314_s11] sm:$0xff]  ;;  %v482_v12 = vld [vmem:[%s2565_s1 + $0x18] sm:$0xff]  ;;  %s1769_s14 = scalar_lea.hbm %s2572_s8, %s1885_s24  ;;  %s1757_s0 = scalar_lea.sflag [#allocation4], %s308_s16 }
  0x1b   : > { %2040 = vmatprep.subr.msk.mxu1 %vm334_vm0, %v2315_v2  ;;  %1937 = vmatprep.subr.msk.mxu0 %vm334_vm0, %v2315_v2  ;;  %p2123_p13 = pnand %p2122_p12, %p2287_p4  ;;  %s2125_s22 = sshll.u32 %s2201_s21, 4  ;;  %s2126_s22 = int_to_ptr.vmem [resolvable:$false] %s2125_s22 }
  0x1c   : > { %2041 = vmatpush3.xpose.msk.msra.mxu1 %vm334_vm0, %v2315_v2  ;;  %1938 = vmatpush3.xpose.msk.msra.mxu0 %vm334_vm0, %v2315_v2  ;;  %s2127_s30 = scalar_lea.vmem %s2126_s22, 256  ;;  %p2128_p1 = scmp.lt.s32.totalorder %s1772_s26, %s2126_s22 }
  0x1d   : > { %1951 = vmatprep.subr.msk.mxu1 %vm334_vm0, %v2315_v2  ;;  %1969 = vmatprep.subr.mxu0 %v2199_v13  ;;  %p2124_p0 = pneg %p2123_p13  ;;  %p2129_p2 = scmp.lt.s32.totalorder %s2127_s30, %s2121_s20 }
  0x1f   : > { %1946 = vmatmul.mubr.msk.f32.vlgmr.msra.gmra.mxu1 %vm334_vm0, %v331_v3  ;;  %1940 = vmatmul.mubr.msk.f32.vlgmr.msra.gmra.mxu0 %vm334_vm0, %v327_v4  ;;  %p2130_p3 = por %p2129_p2, %p2128_p1 }
  0x20   : > { %1952 = vmatpush3.xpose.msk.msra.mxu1 %vm334_vm0, %v2315_v2  ;;  %1948 = vmatprep.mubr.msk.f32.mxu1 %vm334_vm0, %v332_v5 }
  0x21   : > { %1942 = vmatprep.mubr.msk.f32.mxu0 %vm334_vm0, %v328_v6  ;;  %1959 = vmatprep.subr.mxu1 %v2199_v13  ;;  %p2131_p5 = pnand %p2130_p3, %p2124_p0 }
  0x23   : > { %1949 = vmatmul.mubr.msk.f32.gmra.mxu1 %vm334_vm0, %v333_v7  ;;  %1943 = vmatmul.mubr.msk.f32.gmra.mxu0 %vm334_vm0, %v329_v8  ;;  %v1421_v7 = vld [vmem:[%s2567_s3 + $0x18] sm:$0xff]  ;;  %v1420_v8 = vld [vmem:[%s2567_s3 + $0x10] sm:$0xff] }
  0x24   : > { %1953 = vmatprep.mubr.msk.f32.mxu1 %vm334_vm0, %v479_v9  ;;  %1971 = vmatprep.mubr.msk.f32.mxu0 %vm2200_vm1, %v2199_v13  ;;  %v1419_v9 = vld [vmem:[%s2567_s3 + $0x8] sm:$0xff] }
  0x27   : > { %1954 = vmatmul.mubr.msk.f32.vlgmr.msra.gmra.mxu1 %vm334_vm0, %v480_v10  ;;  %v1418_v10 = vld [vmem:[%s2567_s3] sm:$0xff] }
  0x28   : > { %1956 = vmatprep.mubr.msk.f32.mxu1 %vm334_vm0, %v481_v11 }
  0x2b   : > { %1957 = vmatmul.mubr.msk.f32.gmra.mxu1 %vm334_vm0, %v482_v12 }
  0x2c   : > { %1961 = vmatprep.mubr.msk.f32.mxu1 %vm2200_vm1, %v2199_v13 }
  0xdf   : > { %v1947_v14 = vpop.f32.mrf.mxu1  ;;  %v1941_v15 = vpop.f32.mrf.mxu0 }
  0xe0   : > { %473 = vst.msk [vmem:[#allocation2 + $0x28] sm:$0xff] %vm467_vm2, %v1947_v14  ;;  %469 = vst.msk [vmem:[#allocation2 + $0x8] sm:$0xff] %vm467_vm2, %v1941_v15  ;;  %v1362_v14 = vlaneseq }
  0xe1   : > { %v448_v16 = vpop.f32.mrf.mxu1  ;;  %v428_v17 = vpop.f32.mrf.mxu0 }
  0xe2   : > { %472 = vst.msk [vmem:[#allocation2 + $0x20] sm:$0xff] %vm467_vm2, %v448_v16  ;;  %468 = vst.msk [vmem:[#allocation2] sm:$0xff] %vm467_vm2, %v428_v17  ;;  %v1363_v16 = vand.u32 127, %v1362_v14  ;;  %v1365_v17 = vshrl.u32 %v1362_v14, 7 }
  0xe3   : > { %v1950_v18 = vpop.f32.mrf.mxu1  ;;  %v1944_v19 = vpop.f32.mrf.mxu0 }
  0xe4   : > { %475 = vst.msk [vmem:[#allocation2 + $0x38] sm:$0xff] %vm467_vm2, %v1950_v18  ;;  %471 = vst.msk [vmem:[#allocation2 + $0x18] sm:$0xff] %vm467_vm2, %v1944_v19  ;;  %v1366_v19 = vsub.s32 %v1363_v16, %v1365_v17 }
  0xe5   : > { %v458_v20 = vpop.f32.mrf.mxu1  ;;  %v438_v21 = vpop.f32.mrf.mxu0 }
  0xe6   : > { %474 = vst.msk [vmem:[#allocation2 + $0x30] sm:$0xff] %vm467_vm2, %v458_v20  ;;  %470 = vst.msk [vmem:[#allocation2 + $0x10] sm:$0xff] %vm467_vm2, %v438_v21 }
  0xe7   : > { %v1955_v22 = vpop.f32.mrf.mxu1  ;;  %v585_v29 = vld [vmem:[#allocation2 + $0x8] sm:$0xff] }
  0xe8   : > { %v590_v63 = vld [vmem:[#allocation2 + $0x28] sm:$0xff] }
  0xe9   : > { %v565_v23 = vpop.f32.mrf.mxu1  ;;  %v584_v24 = vld [vmem:[#allocation2] sm:$0xff] }
  0xea   : > { %593 = vxpose.xlu0.b32.start.end [1/1] (short) (narrow) %v565_v23, 8  ;;  %1960 = vmatpush3.msra.mxu1 %v584_v24  ;;  %v589_v60 = vld [vmem:[#allocation2 + $0x20] sm:$0xff] }
  0xeb   : > { %v1958_v25 = vpop.f32.mrf.mxu1  ;;  %1964 = vmatprep.subr.mxu1 %v2199_v13  ;;  %v587_v30 = vld [vmem:[#allocation2 + $0x18] sm:$0xff] }
  0xec   : > { %v592_v6 = vld [vmem:[#allocation2 + $0x38] sm:$0xff] }
  0xed   : > { %v575_v26 = vpop.f32.mrf.mxu1  ;;  %v586_v27 = vld [vmem:[#allocation2 + $0x10] sm:$0xff] }
  0xee   : > { %699 = vxpose.xlu0.b32.start.end [1/1] (short) (narrow) %v1955_v22, 8  ;;  %804 = vxpose.xlu1.b32.start.end [1/1] (short) (narrow) %v575_v26, 8  ;;  %v591_v3 = vld [vmem:[#allocation2 + $0x30] sm:$0xff] }
  0xef   : > { %1970 = vmatpush3.msra.mxu0 %v586_v27 }
  0xf0   : > { %1979 = vmatprep.subr.mxu0 %v2199_v13 }
  0xf2   : > { %909 = vxpose.xlu1.b32.start.end [1/1] (short) (narrow) %v1958_v25, 8 }
 0x166   : > { %v609_v28 = vpop.trf.xlu0 }
 0x167   : > { %1962 = vmatmul.mubr.msk.f32.vlgmr.msra.gmra.mxu1 %vm467_vm2, %v609_v28 }
 0x168   : > { %1965 = vmatpush3.msra.mxu1 %v585_v29  ;;  %1966 = vmatprep.mubr.msk.f32.mxu1 %vm2200_vm1, %v2199_v13 }
 0x169   : > { %1974 = vmatprep.subr.mxu1 %v2199_v13 }
 0x16a   : > { %v715_v31 = vpop.trf.xlu0  ;;  %v820_v32 = vpop.trf.xlu1 }
 0x16b   : > { %1967 = vmatmul.mubr.msk.f32.vlgmr.msra.gmra.mxu1 %vm467_vm2, %v715_v31  ;;  %1972 = vmatmul.mubr.msk.f32.vlgmr.msra.gmra.mxu0 %vm467_vm2, %v820_v32 }
 0x16c   : > { %1975 = vmatpush3.msra.mxu1 %v587_v30  ;;  %1976 = vmatprep.mubr.msk.f32.mxu1 %vm2200_vm1, %v2199_v13 }
 0x16d   : > { %1981 = vmatprep.mubr.msk.f32.mxu0 %vm2200_vm1, %v2199_v13  ;;  %1984 = vmatprep.subr.mxu1 %v2199_v13 }
 0x16e   : > { %v925_v33 = vpop.trf.xlu1 }
 0x16f   : > { %1977 = vmatmul.mubr.msk.f32.vlgmr.msra.gmra.mxu1 %vm467_vm2, %v925_v33 }
 0x170   : > { %1986 = vmatprep.mubr.msk.f32.mxu1 %vm2200_vm1, %v2199_v13 }
 0x227   : > { %v695_v34 = vpop.f32.mrf.mxu1 }
 0x228   : > { %v1014_v35 = vsel %vm467_vm2, %v695_v34, -inf }
 0x229   : > { %1015 = vmax.xlane.f32.xlu0 %v1014_v35  ;;  %v1963_v36 = vpop.f32.mrf.mxu1 }
 0x22b   : > { %v800_v37 = vpop.f32.mrf.mxu1  ;;  %v905_v38 = vpop.f32.mrf.mxu0 }
 0x22c   : > { %v1017_v39 = vsel %vm467_vm2, %v800_v37, -inf  ;;  %v1020_v42 = vsel %vm467_vm2, %v905_v38, -inf }
 0x22d   : > { %1018 = vmax.xlane.f32.xlu1 %v1017_v39  ;;  %v1968_v40 = vpop.f32.mrf.mxu1  ;;  %v1973_v41 = vpop.f32.mrf.mxu0 }
 0x22e   : > { %v1874_v41 = vld [vmem:[%s2571_s7] ss:$0 sm:$0xff] }
 0x22f   : > { %v1010_v43 = vpop.f32.mrf.mxu1 }
 0x230   : > { %v1023_v45 = vsel %vm467_vm2, %v1010_v43, -inf }
 0x231   : > { %1021 = vmax.xlane.f32.xlu1 %v1020_v42  ;;  %v1978_v44 = vpop.f32.mrf.mxu1 }
 0x235   : > { %1024 = vmax.xlane.f32.xlu1 %v1023_v45 }
 0x2b2   : > { %v1016_v46 = vpop.xlane.xlu0 %1015 }
 0x2b3   : > { %v1026_v47 = vsub.f32 %v695_v34, %v1016_v46 }
 0x2b5   : > { %v1030_v48 = vmul.f32 1.442695, %v1026_v47 }
 0x2b6   : > { %v1019_v49 = vpop.xlane.xlu1 %1018 }
 0x2b7   : > { %2099 = vpow2.f32 %v1030_v48  ;;  %v1027_v50 = vsub.f32 %v800_v37, %v1019_v49 }
 0x2b9   : > { %v1032_v51 = vmul.f32 1.442695, %v1027_v50 }
 0x2ba   : > { %v1022_v52 = vpop.xlane.xlu1 %1021 }
 0x2bb   : > { %2101 = vpow2.f32 %v1032_v51  ;;  %v1028_v53 = vsub.f32 %v905_v38, %v1022_v52  ;;  %v1559_v52 = vld [vmem:[%s2568_s4 + $0x18] sm:$0xff] }
 0x2bd   : > { %v1034_v54 = vmul.f32 1.442695, %v1028_v53  ;;  %v1557_v53 = vld [vmem:[%s2568_s4 + $0x8] sm:$0xff] }
 0x2be   : > { %v1025_v55 = vpop.xlane.xlu1 %1024 }
 0x2bf   : > { %2103 = vpow2.f32 %v1034_v54  ;;  %v1029_v56 = vsub.f32 %v1010_v43, %v1025_v55  ;;  %v1556_v54 = vld [vmem:[%s2568_s4] sm:$0xff] }
 0x2c1   : > { %v1036_v57 = vmul.f32 1.442695, %v1029_v56 }
 0x2c3   : > { %2105 = vpow2.f32 %v1036_v57 }
 0x2c4   : > { %v2100_v58 = vpop.eup %2099 }
 0x2c5   : > { %1980 = vmatpush3.xpose.msk.msra.mxu0 %vm467_vm2, %v2100_v58  ;;  %v1038_v59 = vsel %vm467_vm2, %v2100_v58, 0.0 }
 0x2c6   : > { %1039 = vadd.xlane.f32.xlu0 %v1038_v59  ;;  %1989 = vmatprep.subr.mxu0 %v2199_v13  ;;  %v1876_v59 = vld [vmem:[%s2571_s7 + $0x1] ss:$0 sm:$0xff] }
 0x2c8   : > { %v2102_v61 = vpop.eup %2101  ;;  %1982 = vmatmul.mubr.msk.f32.vlgmr.msra.gmra.mxu0 %vm467_vm2, %v589_v60 }
 0x2c9   : > { %1985 = vmatpush3.xpose.msk.msra.mxu1 %vm467_vm2, %v2102_v61  ;;  %v1041_v62 = vsel %vm467_vm2, %v2102_v61, 0.0  ;;  %1991 = vmatprep.mubr.msk.f32.mxu0 %vm2200_vm1, %v2199_v13  ;;  %v1877_v61 = vld [vmem:[%s2571_s7 + $0x2] ss:$0 sm:$0xff] }
 0x2ca   : > { %1042 = vadd.xlane.f32.xlu1 %v1041_v62  ;;  %1994 = vmatprep.subr.mxu1 %v2199_v13 }
 0x2cc   : > { %v2104_v0 = vpop.eup %2103  ;;  %1987 = vmatmul.mubr.msk.f32.vlgmr.msra.gmra.mxu1 %vm467_vm2, %v590_v63 }
 0x2cd   : > { %1990 = vmatpush3.xpose.msk.msra.mxu0 %vm467_vm2, %v2104_v0  ;;  %v1044_v1 = vsel %vm467_vm2, %v2104_v0, 0.0  ;;  %1996 = vmatprep.mubr.msk.f32.mxu1 %vm2200_vm1, %v2199_v13  ;;  %v1652_v0 = vld [vmem:[%s2569_s5 + $0x38] sm:$0xff] }
 0x2ce   : > { %1045 = vadd.xlane.f32.xlu0 %v1044_v1  ;;  %1999 = vmatprep.subr.mxu0 %v2199_v13  ;;  %v1651_v1 = vld [vmem:[%s2569_s5 + $0x30] sm:$0xff] }
 0x2d0   : > { %v2106_v4 = vpop.eup %2105  ;;  %1992 = vmatmul.mubr.msk.f32.vlgmr.msra.gmra.mxu0 %vm467_vm2, %v591_v3  ;;  %v1650_v3 = vld [vmem:[%s2569_s5 + $0x28] sm:$0xff] }
 0x2d1   : > { %1995 = vmatpush3.xpose.msk.msra.mxu1 %vm467_vm2, %v2106_v4  ;;  %v1047_v5 = vsel %vm467_vm2, %v2106_v4, 0.0  ;;  %2007 = vmatprep.mubr.msk.f32.mxu0 %vm2200_vm1, %v2199_v13  ;;  %v1649_v4 = vld [vmem:[%s2569_s5 + $0x20] sm:$0xff] }
 0x2d2   : > { %1048 = vadd.xlane.f32.xlu1 %v1047_v5  ;;  %2010 = vmatprep.subr.mxu1 %v2199_v13  ;;  %v1648_v5 = vld [vmem:[%s2569_s5 + $0x18] sm:$0xff] }
 0x2d3   : > { %2000 = vmatpush3.msra.mxu0 %v1421_v7  ;;  %v1646_v7 = vld [vmem:[%s2569_s5 + $0x8] sm:$0xff] }
 0x2d4   : > { %1997 = vmatmul.mubr.msk.f32.vlgmr.msra.gmra.mxu1 %vm467_vm2, %v592_v6  ;;  %2001 = vmatprep.subr.mxu0 %v2199_v13  ;;  %v1647_v6 = vld [vmem:[%s2569_s5 + $0x10] sm:$0xff] }
 0x2d5   : > { %2018 = vmatprep.mubr.msk.f32.mxu1 %vm2200_vm1, %v2199_v13  ;;  %2002 = vmatpush3.msra.mxu0 %v1420_v8  ;;  %v1645_v8 = vld [vmem:[%s2569_s5] sm:$0xff] }
 0x2d6   : > { %2003 = vmatprep.subr.mxu0 %v2199_v13  ;;  %2011 = vmatpush3.msra.mxu1 %v1559_v52 }
 0x2d7   : > { %2004 = vmatpush3.msra.mxu0 %v1419_v9  ;;  %2012 = vmatprep.subr.mxu1 %v2199_v13  ;;  %v1878_v9 = vld [vmem:[%s2570_s6] ss:$0 sm:$0xff] }
 0x2d8   : > { %2005 = vmatprep.subr.mxu0 %v2199_v13 }
 0x2d9   : > { %2006 = vmatpush3.msra.mxu0 %v1418_v10 }
 0x2da   : > { %2021 = vmatprep.subr.mxu0 %v2199_v13 }
 0x34f   : > { %v1040_v11 = vpop.xlane.xlu0 %1039 }
 0x350   : > { %2107 = vrcp.f32 %v1040_v11 }
 0x353   : > { %v1043_v12 = vpop.xlane.xlu1 %1042 }
 0x354   : > { %2109 = vrcp.f32 %v1043_v12 }
 0x357   : > { %v1046_v15 = vpop.xlane.xlu0 %1045 }
 0x358   : > { %2111 = vrcp.f32 %v1046_v15 }
 0x35b   : > { %v1049_v18 = vpop.xlane.xlu1 %1048 }
 0x35c   : > { %2113 = vrcp.f32 %v1049_v18 }
 0x35d   : > { %v2108_v20 = vpop.eup %2107 }
 0x35e   : > { %v1367_v21 = vrot.slane %v2108_v20, %v1366_v19 }
 0x361   : > { %v2110_v22 = vpop.eup %2109 }
 0x362   : > { %v1371_v26 = vrot.slane %v2110_v22, %v1366_v19 }
 0x365   : > { %v2112_v27 = vpop.eup %2111 }
 0x366   : > { %v1375_v31 = vrot.slane %v2112_v27, %v1366_v19 }
 0x369   : > { %v2114_v32 = vpop.eup %2113 }
 0x36a   : > { %v1379_v36 = vrot.slane %v2114_v32, %v1366_v19 }
 0x388   : > { %v1122_v23 = vpop.f32.mrf.mxu0 }
 0x389   : > { %v1414_v24 = vmul.f32 %v1367_v21, %v1122_v23 }
 0x38a   : > { %v1983_v25 = vpop.f32.mrf.mxu0 }
 0x38b   : > { %1426 = vxpose.xlu0.b32.start [1/4] (short) (narrow) %v1414_v24, 8 }
 0x38c   : > { %v1198_v28 = vpop.f32.mrf.mxu1 }
 0x38d   : > { %v1415_v29 = vmul.f32 %v1371_v26, %v1198_v28 }
 0x38e   : > { %v1988_v30 = vpop.f32.mrf.mxu1 }
 0x38f   : > { %1427 = vxpose.xlu0.b32.cont [2/4] (short) (narrow) %v1415_v29, 8 }
 0x390   : > { %v1274_v33 = vpop.f32.mrf.mxu0 }
 0x391   : > { %v1416_v34 = vmul.f32 %v1375_v31, %v1274_v33  ;;  %v1882_v33 = vld [vmem:[%s2571_s7 + $0x4] ss:$0 sm:$0xff] }
 0x392   : > { %v1993_v35 = vpop.f32.mrf.mxu0 }
 0x393   : > { %1428 = vxpose.xlu0.b32.cont [3/4] (short) (narrow) %v1416_v34, 8  ;;  %v1883_v35 = vld [vmem:[%s2571_s7 + $0x5] ss:$0 sm:$0xff] }
 0x394   : > { %v1350_v37 = vpop.f32.mrf.mxu1 }
 0x395   : > { %v1417_v38 = vmul.f32 %v1379_v36, %v1350_v37 }
 0x396   : > { %v1998_v39 = vpop.f32.mrf.mxu1 }
 0x397   : > { %1429 = vxpose.xlu0.b32.end [4/4] (short) (narrow) %v1417_v38, 8 }
 0x407   : > { %v1442_v40 = vpop.trf.xlu0 }
 0x408   : > { %2008 = vmatmul.mubr.msk.f32.vlgmr.msra.gmra.mxu0 %vm334_vm0, %v1442_v40 }
 0x409   : > { %2037 = vmatprep.mubr.msk.f32.mxu0 %vm2200_vm1, %v2199_v13  ;;  %2022 = vmatpush3.msra.mxu0 %v1652_v0 }
 0x40a   : > { %2023 = vmatprep.subr.mxu0 %v2199_v13 }
 0x40b   : > { %2024 = vmatpush3.msra.mxu0 %v1651_v1 }
 0x40c   : > { %2025 = vmatprep.subr.mxu0 %v2199_v13 }
 0x40d   : > { %2026 = vmatpush3.msra.mxu0 %v1650_v3 }
 0x40e   : > { %2027 = vmatprep.subr.mxu0 %v2199_v13 }
 0x40f   : > { %2028 = vmatpush3.msra.mxu0 %v1649_v4 }
 0x410   : > { %2029 = vmatprep.subr.mxu0 %v2199_v13 }
 0x411   : > { %2030 = vmatpush3.msra.mxu0 %v1648_v5 }
 0x412   : > { %2031 = vmatprep.subr.mxu0 %v2199_v13 }
 0x413   : > { %2032 = vmatpush3.msra.mxu0 %v1647_v6 }
 0x414   : > { %2033 = vmatprep.subr.mxu0 %v2199_v13 }
 0x415   : > { %2034 = vmatpush3.msra.mxu0 %v1646_v7 }
 0x416   : > { %2035 = vmatprep.subr.mxu0 %v2199_v13 }
 0x417   : > { %2036 = vmatpush3.msra.mxu0 %v1645_v8 }
 0x4c8   : > { %v1527_v42 = vpop.f32.mrf.mxu0 }
 0x4c9   : > { %v1528_v43 = vadd.f32 %v1874_v41, %v1527_v42 }
 0x4ca   : > { %v2009_v44 = vpop.f32.mrf.mxu0 }
 0x4cb   : > { %v2450_v45 = vadd.f32 %v1528_v43, %v2315_v2  ;;  %v1558_v2 = vld [vmem:[%s2568_s4 + $0x10] sm:$0xff] }
 0x4cc   : > { %2013 = vmatpush3.msra.mxu1 %v1558_v2 }
 0x4cd   : > { %v1532_v46 = vsel %vm334_vm0, %v2450_v45, 0.0  ;;  %2014 = vmatprep.subr.mxu1 %v2199_v13 }
 0x4ce   : > { %1533 = vadd.xlane.f32.xlu1 %v1532_v46  ;;  %2015 = vmatpush3.msra.mxu1 %v1557_v53 }
 0x4cf   : > { %2016 = vmatprep.subr.mxu1 %v2199_v13  ;;  %v1880_v13 = vld [vmem:[%s2571_s7 + $0x3] ss:$0 sm:$0xff] }
 0x4d0   : > { %2017 = vmatpush3.msra.mxu1 %v1556_v54 }
 0x557   : > { %v1534_v47 = vpop.xlane.xlu1 %1533 }
 0x558   : > { %v1536_v48 = vmul.f32 0.03125, %v1534_v47 }
 0x55a   : > { %v1537_v49 = vsub.f32 %v2450_v45, %v1536_v48 }
 0x55c   : > { %v1538_v50 = vmul.f32 %v1537_v49, %v1537_v49 }
 0x55e   : > { %v1539_v51 = vsel %vm334_vm0, %v1538_v50, 0.0 }
 0x55f   : > { %1540 = vadd.xlane.f32.xlu1 %v1539_v51 }
 0x5e8   : > { %v1541_v55 = vpop.xlane.xlu1 %1540 }
 0x5e9   : > { %v1542_v56 = vmul.f32 0.03125, %v1541_v55 }
 0x5eb   : > { %v1543_v57 = vadd.f32 1e-05, %v1542_v56 }
 0x5ed   : > { %2115 = vrsqrt.f32 %v1543_v57 }
 0x5fa   : > { %v2116_v58 = vpop.eup %2115 }
 0x5fb   : > { %v1545_v60 = vmul.f32 %v2116_v58, %v1537_v49 }
 0x5fd   : > { %v1550_v62 = vmul.f32 %v1876_v59, %v1545_v60 }
 0x5ff   : > { %v1555_v63 = vadd.f32 %v1877_v61, %v1550_v62 }
 0x601   : > { %2019 = vmatmul.mubr.msk.f32.vlgmr.msra.gmra.mxu1 %vm334_vm0, %v1555_v63 }
 0x6c1   : > { %v1636_v10 = vpop.f32.mrf.mxu1 }
 0x6c2   : > { %v1637_v11 = vadd.f32 %v1878_v9, %v1636_v10 }
 0x6c3   : > { %v2020_v12 = vpop.f32.mrf.mxu1 }
 0x6c4   : > { %v1641_v14 = vmul.f32 0.70710677, %v1637_v11  ;;  %v1640_v16 = vmul.f32 0.5, %v1637_v11 }
 0x6c6   : > { %2117 = verf.f32 %v1641_v14 }
 0x6d3   : > { %v2118_v15 = vpop.eup %2117 }
 0x6d4   : > { %v1643_v17 = vadd.f32 1.0, %v2118_v15 }
 0x6d6   : > { %v1644_v18 = vmul.f32 %v1643_v17, %v1640_v16 }
 0x6d8   : > { %2038 = vmatmul.mubr.msk.f32.vlgmr.msra.gmra.mxu0 %vm1657_vm3, %v1644_v18 }
 0x798   : > { %v1727_v19 = vpop.f32.mrf.mxu0 }
 0x799   : > { %v1728_v20 = vadd.f32 %v1880_v13, %v1727_v19 }
 0x79a   : > { %v2039_v21 = vpop.f32.mrf.mxu0 }
 0x79b   : > { %v1731_v22 = vadd.f32 %v1728_v20, %v2450_v45 }
 0x79d   : > { %v1732_v23 = vsel %vm334_vm0, %v1731_v22, 0.0 }
 0x79e   : > { %1733 = vadd.xlane.f32.xlu1 %v1732_v23 }
 0x827   : > { %v1734_v24 = vpop.xlane.xlu1 %1733 }
 0x828   : > { %v1735_v25 = vmul.f32 0.03125, %v1734_v24 }
 0x82a   : > { %v1736_v26 = vsub.f32 %v1731_v22, %v1735_v25 }
 0x82c   : > { %v1737_v27 = vmul.f32 %v1736_v26, %v1736_v26 }
 0x82e   : > { %v1738_v28 = vsel %vm334_vm0, %v1737_v27, 0.0 }
 0x82f   : > { %1739 = vadd.xlane.f32.xlu1 %v1738_v28 }
 0x8b8   : > { %v1740_v29 = vpop.xlane.xlu1 %1739 }
 0x8b9   : > { %v1741_v30 = vmul.f32 0.03125, %v1740_v29 }
 0x8bb   : > { %v1742_v31 = vadd.f32 1e-05, %v1741_v30 }
 0x8bd   : > { %2119 = vrsqrt.f32 %v1742_v31 }
 0x8ca   : > { %v2120_v32 = vpop.eup %2119 }
 0x8cb   : > { %v1744_v34 = vmul.f32 %v2120_v32, %v1736_v26 }
 0x8cd   : > { %v1749_v36 = vmul.f32 %v1882_v33, %v1744_v34 }
 0x8cf   : > { %v1754_v37 = vadd.f32 %v1883_v35, %v1749_v36 }
 0x8d1   : > { %1755 = vst.msk [vmem:[%s310_s25] sm:$0xff] %vm334_vm0, %v1754_v37 }
 0x8d2   : > { %2134 = shalt.err (!%p2131_p5)
}
 0x8d3   : > { %s2135_s19 = scalar_lea.hbm %s1769_s14, 128  ;;  %s2139_s24 = scalar_lea.hbm %s2572_s8, 256 }
 0x8d4   : > { %p2136_p6 = scmp.ne.s32.totalorder %s1769_s14, %s2135_s19  ;;  %p2140_p10 = scmp.lt.s32.totalorder %s1769_s14, %s2572_s8 }
 0x8d5   : > { %p2141_p11 = scmp.lt.s32.totalorder %s2139_s24, %s2135_s19 }
 0x8d6   : > { %p2137_p7 = pnand %p2136_p6, %p2287_p4 }
 0x8d7   : > { %p2142_p12 = por %p2141_p11, %p2140_p10 }
 0x8d8   : > { %p2138_p9 = pneg %p2137_p7 }
 0x8da   : > { %p2143_p13 = pnand %p2142_p12, %p2138_p9 }
 0x8dc   : > { %2146 = shalt.err (!%p2143_p13)
}
 0x8dd   : > { %2042 = dma.vmem_to_hbm [thread:$0]  (%p2287_p4), %s1772_s26, 128, %s1769_s14, %s1757_s0  }
 0x8de PF: > { %p2048_p0 = scmp.ge.s32.totalorder %s2197_s10, 2  ;;  %s1783_s12 = sand.u32 1, %s2177_s27  }
 0x8df   : > { %s1784_s20 = scalar_lea.sflag [#allocation4], %s1783_s12 }
 0x8e0   : > { %p2045_p1 = pnand %p2048_p0, %p2294_p8 }
 0x8e2   : > { %p2046_p2 = pneg %p2045_p1 }
 0x8e4   : > { %2172 = dma.done.wait (%p2046_p2), %s1784_s20, 128  }
 0x8e5   : > { %2174 = vsyncadd (%p2046_p2), %s1784_s20, 4294967168  ;;  %s21_s10 = sadd.s32 1, %s2197_s10   ;;  %s2577_s27 = smov %s2181_s28 }
 0x8e6   : > { %p18_p3 = scmp.ge.s32.totalorder %s21_s10, 4   ;;  %s2578_s28 = smov %s2185_s29 }
 0x8e7   : > { %s2579_s29 = smov %s2300_s18  ;;  %s2580_s30 = smov %s2193_s9 }
 0x8e8   : > { %s2581_s9 = smov %s2583_s13  ;;  %20 = sbr.rel (!%p18_p3) target bundleno = 6 (0x6), region = 93 }
 0x8ed   :  { %1789 = vsyncpa [#allocation4], 1 }
 0x8ee   :  { %1791 = vsyncpa [#allocation4 + $0x1], 1 }

</bundles_post_ra>
